<compile_context>
chip_gen: v7x
topology: tpu7x:2x2x1
jax: 0.10.0
libtpu: 0.0.40
codegen_flags: <defaults>
</compile_context>

<pallas_src>
import math
import functools

import numpy as np
import jax
import jax.numpy as jnp
from jax.experimental import pallas as pl
from jax.experimental.pallas import tpu as pltpu

F32 = jnp.float32
BF16 = jnp.bfloat16
_NEG = -float(np.finfo(np.float32).max)


# ------------------------------------------------------------------
# math helpers (shared by the kernel and the pure-JAX reference)
# ------------------------------------------------------------------

def _gelu(x):
    # tanh-approx GELU (lowers onto the EUP).
    # TODO(synk): exact erf-GELU (PyTorch nn.GELU default) once Mosaic erf lowering is
    # verified; ~1e-3 deviation (appears in the time MLP and the GEGLU gate).
    c = 0.7978845608028654  # sqrt(2/pi)
    return 0.5 * x * (1.0 + jnp.tanh(c * (x + 0.044715 * x * x * x)))


def _layernorm(x, g, b):
    mu = jnp.mean(x, axis=-1, keepdims=True)
    var = jnp.mean((x - mu) * (x - mu), axis=-1, keepdims=True)   # biased var (torch)
    return (x - mu) * jax.lax.rsqrt(var + 1e-5) * g + b


def _mm(a, w):
    # bf16 operands, f32 accumulation (MXU path) - identical in kernel and reference.
    return jnp.dot(a.astype(BF16), w, preferred_element_type=F32)


def _sinusoidal(time, dim):
    half = dim // 2
    freqs = jnp.exp(jnp.arange(half, dtype=F32) * -(math.log(10000.0) / (half - 1)))
    se = time.astype(F32).reshape(-1, 1) * freqs[None, :]
    return jnp.sin(se), jnp.cos(se)


# ------------------------------------------------------------------
# The fused network kernel: one grid step == one encoder layer
# ------------------------------------------------------------------

def _fused_net_kernel(
        # grid-invariant inputs (DMA'd once, stay VMEM-resident across the depth grid)
        sin_ref, cos_ref, x_ref, cond_ref, pos_ref, kmask_ref, bias_ref,
        tw1a_ref, tw1b_ref, tb1_ref, tw2_ref, tb2_ref, pw_ref, pb_ref,
        iwa_ref, iwb_ref, ib_ref, cw_ref, cb_ref,
        ng_ref, nb_ref, ow_ref, ob_ref,
        # per-layer weights, streamed (double-buffered) along the depth grid axis
        sng_ref, snb_ref, wqkv_ref, wo_ref, bo_ref,
        cwv_ref, cwo_ref, cbo_ref,
        fng_ref, fnb_ref, fw1_ref, fb1_ref, fw2_ref, fb2_ref,
        # output + VMEM-resident state
        out_ref, h_vmem, ctx_vmem,
        *, B, L, D, heads, dim_head, ffh, latent, scale):
    layer = pl.program_id(0)
    inner = heads * dim_head
    BL = B * L

    # ---------------- preamble: first grid step only ----------------
    @pl.when(layer == 0)
    def _preamble():
        # time MLP (sin/cos computed outside; sin/cos halves fold into a split time_w1)
        t = (jnp.dot(sin_ref[...].astype(BF16), tw1a_ref[...], preferred_element_type=F32)
             + jnp.dot(cos_ref[...].astype(BF16), tw1b_ref[...], preferred_element_type=F32)
             + tb1_ref[...])                                                   # [B, 4D]
        temb = (jnp.dot(_gelu(t).astype(BF16), tw2_ref[...],
                        preferred_element_type=F32) + tb2_ref[...])            # [B, 4D]
        tpe = (jnp.dot(_gelu(temb).astype(BF16), pw_ref[...],
                       preferred_element_type=F32) + pb_ref[...])              # [B, D]

        cond16 = cond_ref[...].astype(BF16)                                    # [B, Cd]
        ctx_vmem[...] = (jnp.dot(cond16, cw_ref[...],
                                 preferred_element_type=F32) + cb_ref[...])    # context_proj

        # input_proj(cat(x, cond)) == x @ W[:lat] + cond @ W[lat:] + b  (exact split)
        x2d = x_ref[...].reshape(BL, latent).astype(BF16)
        tx_a = jnp.dot(x2d, iwa_ref[...], preferred_element_type=F32)          # [B*L, D]
        tx_b = (jnp.dot(cond16, iwb_ref[...], preferred_element_type=F32)
                + ib_ref[...] + tpe)                                           # [B, D]
        h_vmem[...] = (tx_a.reshape(B, L, D) + tx_b[:, None, :]
                       + pos_ref[...][None, :, :])

    # ---------------- one encoder layer per grid step ----------------
    h = h_vmem[...]                                                            # [B, L, D] f32
    keep = jnp.broadcast_to(kmask_ref[...] > 0.5, (B, L, L))                   # key-side mask
    bias = bias_ref[...]                                                       # [H, L, L]

    # -- pre-norm self-attention: fused QKV matmul, one out-projection --
    hn = _layernorm(h.reshape(BL, D), sng_ref[0], snb_ref[0])
    qkv = jnp.dot(hn.astype(BF16), wqkv_ref[0],
                  preferred_element_type=F32).reshape(B, L, 3 * inner).astype(BF16)
    o_heads = []
    for hd in range(heads):                                                    # static unroll
        # TODO(synk): dim_head=64 slices are not 128-lane aligned; relayout qkv head-major
        # (or pad per-head width to 128) at production sizes.
        q = qkv[:, :, hd * dim_head:(hd + 1) * dim_head]
        k = qkv[:, :, inner + hd * dim_head:inner + (hd + 1) * dim_head]
        v = qkv[:, :, 2 * inner + hd * dim_head:2 * inner + (hd + 1) * dim_head]
        dots = jax.lax.dot_general(q, k, (((2,), (2,)), ((0,), (0,))),
                                   preferred_element_type=F32)                 # [B, L, L]
        dots = dots * scale + bias[hd][None, :, :]
        dots = jnp.where(keep, dots, _NEG)
        dots = dots - jnp.max(dots, axis=-1, keepdims=True)
        p = jnp.exp(dots)
        p = p / jnp.sum(p, axis=-1, keepdims=True)                             # exact softmax
        o_heads.append(jax.lax.dot_general(p.astype(BF16), v,
                                           (((2,), (1,)), ((0,), (0,))),
                                           preferred_element_type=F32))        # [B, L, dh]
    o_all = jnp.concatenate(o_heads, axis=-1).reshape(BL, inner)
    attn = jnp.dot(o_all.astype(BF16), wo_ref[0], preferred_element_type=F32) + bo_ref[0]
    h = h + attn.reshape(B, L, D)

    # -- cross-attention with a single context token: softmax over one key == 1, so the
    #    block reduces EXACTLY to  h += (context @ W_v) @ W_o + b_o  broadcast over L --
    cv = jnp.dot(ctx_vmem[...].astype(BF16), cwv_ref[0], preferred_element_type=F32)
    ca = jnp.dot(cv.astype(BF16), cwo_ref[0], preferred_element_type=F32) + cbo_ref[0]
    h = h + ca[:, None, :]

    # -- pre-norm GEGLU feed-forward --
    hn2 = _layernorm(h.reshape(BL, D), fng_ref[0], fnb_ref[0])
    hid = jnp.dot(hn2.astype(BF16), fw1_ref[0], preferred_element_type=F32) + fb1_ref[0]
    act = hid[:, :ffh] * _gelu(hid[:, ffh:])                                   # 128-aligned slices
    ff = jnp.dot(act.astype(BF16), fw2_ref[0], preferred_element_type=F32) + fb2_ref[0]
    h = h + ff.reshape(B, L, D)
    h_vmem[...] = h

    # ---------------- final LayerNorm + output projection: last grid step ----------------
    @pl.when(layer == pl.num_programs(0) - 1)
    def _final():
        hn3 = _layernorm(h.reshape(BL, D), ng_ref[...], nb_ref[...])
        out = jnp.dot(hn3.astype(BF16), ow_ref[...], preferred_element_type=F32) + ob_ref[...]
        # TODO(synk): latent_dim=16 (<128 lanes) makes this single 2 KB store masked; at
        # production dims emit a (B, L*latent) lane-dense block and reshape outside.
        out_ref[...] = out.reshape(B, L, latent)


# ------------------------------------------------------------------
# Parameter init (deterministic, synthetic) + packing for the kernel
# ------------------------------------------------------------------

def init_params(key, *, tx_dim, depth, heads, dim_head, latent_dim,
                context_dim, max_seq_len, ff_mult=4):
    keys = iter(jax.random.split(key, 256))

    def w(shape, s=0.02):
        return jax.random.normal(next(keys), shape, jnp.float32) * s

    D = tx_dim
    TD = tx_dim * 4
    inner = heads * dim_head
    ffh = D * ff_mult
    p = dict(
        time_w1=w((D, TD)), time_b1=jnp.zeros(TD, jnp.float32),
        time_w2=w((TD, TD)), time_b2=jnp.zeros(TD, jnp.float32),
        tpe_w=w((TD, D)), tpe_b=jnp.zeros(D, jnp.float32),
        pos_emb=w((max_seq_len, D), 1.0),
        null_emb=w((1, D), 1.0),                       # unused (x_self_cond provided)
        ctx_w=w((context_dim, D)), ctx_b=jnp.zeros(D, jnp.float32),
        in_w=w((latent_dim + context_dim, D)), in_b=jnp.zeros(D, jnp.float32),
        norm_g=jnp.ones(D, jnp.float32), norm_b=jnp.zeros(D, jnp.float32),
        # init_zero_(output_proj)
        out_w=jnp.zeros((D, latent_dim), jnp.float32),
        out_b=jnp.zeros(latent_dim, jnp.float32),
        rel_bias_emb=w((32, heads)),                   # T5 rel-pos bias (shared)
    )
    layers = []
    for _ in range(depth):
        layers.append(dict(
            sa_norm_g=jnp.ones(D), sa_norm_b=jnp.zeros(D),
            sa_wq=w((D, inner)), sa_wk=w((D, inner)), sa_wv=w((D, inner)),
            sa_wo=w((inner, D)), sa_bo=jnp.zeros(D),
            ca_norm_g=jnp.ones(D), ca_norm_b=jnp.zeros(D),
            ca_wq=w((D, inner)), ca_wk=w((D, inner)), ca_wv=w((D, inner)),
            ca_wo=w((inner, D)), ca_bo=jnp.zeros(D),
            ff_norm_g=jnp.ones(D), ff_norm_b=jnp.zeros(D),
            ff_w1=w((D, 2 * ffh)), ff_b1=jnp.zeros(2 * ffh),
            ff_w2=w((ffh, D)), ff_b2=jnp.zeros(D),
        ))
    p['layers'] = layers
    return p


def t5_relative_position_bias(emb, L, dim_head, num_buckets=32, max_distance=128):
    """emb: [num_buckets, heads] -> bias [heads, L, L] (scaled by sqrt(dim_head))."""
    q_pos = np.arange(L)[:, None]
    k_pos = np.arange(L)[None, :]
    rel = k_pos - q_pos
    n = -rel
    nb = num_buckets // 2                                    # bidirectional
    ret = (n < 0).astype(np.int64) * nb
    n = np.abs(n)
    max_exact = nb // 2
    is_small = n < max_exact
    val_if_large = max_exact + (
        np.log(np.maximum(n, 1) / max_exact) /
        math.log(max_distance / max_exact) * (nb - max_exact)).astype(np.int64)
    val_if_large = np.minimum(val_if_large, nb - 1)
    bucket = ret + np.where(is_small, n, val_if_large)       # [L, L] (static)
    values = emb[jnp.asarray(bucket)]                        # [L, L, H]
    bias = jnp.transpose(values, (2, 0, 1))                  # [H, L, L]
    return (bias * (dim_head ** 0.5)).astype(F32)
    # TODO(synk): verify rel-bias * sqrt(dim_head) ordering against the pinned
    # x-transformers version (matches the previously reviewed implementation).


def pack_params(p, *, tx_dim, latent_dim, heads, dim_head, max_seq_len):
    """Pre-cast weights to bf16, fuse QKV, stack per-layer weights on a depth axis,
    reshape biases to rows, and precompute the T5 rel-pos bias (hoisted, feedback #9)."""
    D = tx_dim
    half = D // 2

    def w16(a):
        return a.astype(BF16)

    def row(a):
        return a.reshape(1, -1).astype(F32)

    def stack(fn):
        return jnp.stack([fn(l) for l in p['layers']])

    pp = dict(
        time_w1a=w16(p['time_w1'][:half]), time_w1b=w16(p['time_w1'][half:]),
        time_b1=row(p['time_b1']),
        time_w2=w16(p['time_w2']), time_b2=row(p['time_b2']),
        tpe_w=w16(p['tpe_w']), tpe_b=row(p['tpe_b']),
        in_wa=w16(p['in_w'][:latent_dim]), in_wb=w16(p['in_w'][latent_dim:]),
        in_b=row(p['in_b']),
        ctx_w=w16(p['ctx_w']), ctx_b=row(p['ctx_b']),
        pos_scaled=(p['pos_emb'] * (D ** -0.5)).astype(F32),
        norm_g=row(p['norm_g']), norm_b=row(p['norm_b']),
        out_w=w16(p['out_w']), out_b=row(p['out_b']),
        rel_bias=t5_relative_position_bias(p['rel_bias_emb'], max_seq_len, dim_head),
        # per-layer weights stacked along a leading depth axis (streamed by the grid)
        sa_ng=stack(lambda l: row(l['sa_norm_g'])),
        sa_nb=stack(lambda l: row(l['sa_norm_b'])),
        sa_wqkv=stack(lambda l: jnp.concatenate(
            [l['sa_wq'], l['sa_wk'], l['sa_wv']], axis=1).astype(BF16)),
        sa_wo=stack(lambda l: w16(l['sa_wo'])),
        sa_bo=stack(lambda l: row(l['sa_bo'])),
        ca_wv=stack(lambda l: w16(l['ca_wv'])),
        ca_wo=stack(lambda l: w16(l['ca_wo'])),
        ca_bo=stack(lambda l: row(l['ca_bo'])),
        ff_ng=stack(lambda l: row(l['ff_norm_g'])),
        ff_nb=stack(lambda l: row(l['ff_norm_b'])),
        ff_w1=stack(lambda l: w16(l['ff_w1'])),
        ff_b1=stack(lambda l: row(l['ff_b1'])),
        ff_w2=stack(lambda l: w16(l['ff_w2'])),
        ff_b2=stack(lambda l: row(l['ff_b2'])),
    )
    return pp


# ------------------------------------------------------------------
# Forward pass: a single fused pallas_call
# ------------------------------------------------------------------

@functools.partial(jax.jit, static_argnames=('tx_dim', 'heads', 'dim_head'))
def diffusion_transformer_forward(pp, x, mask, time, x_self_cond, *,
                                  tx_dim, heads, dim_head):
    B, L, latent = x.shape
    D = tx_dim
    half = D // 2
    inner = heads * dim_head
    Cd = x_self_cond.shape[-1]
    depth = pp['sa_wqkv'].shape[0]
    ffh = pp['ff_w2'].shape[1]

    sin_se, cos_se = _sinusoidal(time, D)                     # [B, half] each (tiny, once)
    cond = x_self_cond.reshape(B, Cd).astype(F32)
    kmask = mask.astype(F32).reshape(B, 1, L)                 # key-side mask only
    pos = pp['pos_scaled'][:L]                                # [L, D]
    rel_bias = pp['rel_bias'][:, :L, :L]                      # [H, L, L] (precomputed)

    def _cs(*shape):      # grid-invariant full-array block (fetched once, stays resident)
        n = len(shape)
        return pl.BlockSpec(shape, lambda l, n=n: (0,) * n)

    def _ls(*rest):       # per-layer stacked block, indexed by the depth grid axis
        n = len(rest)
        return pl.BlockSpec((1,) + rest, lambda l, n=n: (l,) + (0,) * n)

    kern = functools.partial(
        _fused_net_kernel, B=B, L=L, D=D, heads=heads, dim_head=dim_head,
        ffh=ffh, latent=latent, scale=dim_head ** -0.5)

    # TODO(synk): at production dims set CompilerParams(vmem_limit_bytes=...) and/or tile
    # ff_w1/ff_w2 over an inner grid axis so double-buffered streamed layer weights fit
    # v7x's 64 MiB VMEM.
    out = pl.pallas_call(
        kern,
        out_shape=jax.ShapeDtypeStruct((B, L, latent), F32),
        grid=(depth,),
        in_specs=[
            _cs(B, half), _cs(B, half),                       # sin/cos of time
            _cs(B, L, latent), _cs(B, Cd),                    # x, x_self_cond
            _cs(L, D), _cs(B, 1, L), _cs(heads, L, L),        # pos, key mask, rel bias
            _cs(half, 4 * D), _cs(half, 4 * D), _cs(1, 4 * D),
            _cs(4 * D, 4 * D), _cs(1, 4 * D),
            _cs(4 * D, D), _cs(1, D),
            _cs(latent, D), _cs(Cd, D), _cs(1, D),
            _cs(Cd, D), _cs(1, D),
            _cs(1, D), _cs(1, D), _cs(D, latent), _cs(1, latent),
            _ls(1, D), _ls(1, D),
            _ls(D, 3 * inner), _ls(inner, D), _ls(1, D),
            _ls(D, inner), _ls(inner, D), _ls(1, D),
            _ls(1, D), _ls(1, D),
            _ls(D, 2 * ffh), _ls(1, 2 * ffh), _ls(ffh, D), _ls(1, D),
        ],
        out_specs=pl.BlockSpec((B, L, latent), lambda l: (0, 0, 0)),
        scratch_shapes=[pltpu.VMEM((B, L, D), F32),           # h: VMEM-resident across layers
                        pltpu.VMEM((B, D), F32)],             # projected context
        compiler_params=pltpu.CompilerParams(
            dimension_semantics=("arbitrary",)),
    )(sin_se, cos_se, x.astype(F32), cond, pos, kmask, rel_bias,
      pp['time_w1a'], pp['time_w1b'], pp['time_b1'], pp['time_w2'], pp['time_b2'],
      pp['tpe_w'], pp['tpe_b'], pp['in_wa'], pp['in_wb'], pp['in_b'],
      pp['ctx_w'], pp['ctx_b'], pp['norm_g'], pp['norm_b'], pp['out_w'], pp['out_b'],
      pp['sa_ng'], pp['sa_nb'], pp['sa_wqkv'], pp['sa_wo'], pp['sa_bo'],
      pp['ca_wv'], pp['ca_wo'], pp['ca_bo'],
      pp['ff_ng'], pp['ff_nb'], pp['ff_w1'], pp['ff_b1'], pp['ff_w2'], pp['ff_b2'])
    return out


# ------------------------------------------------------------------
# Pure-JAX reference (same math / dtypes) for validation
# ------------------------------------------------------------------

@functools.partial(jax.jit, static_argnames=('heads', 'dim_head'))
def reference_forward(pp, x, mask, time, x_self_cond, *, heads, dim_head):
    B, L, latent = x.shape
    D = pp['in_b'].shape[-1]
    inner = heads * dim_head
    depth = pp['sa_wqkv'].shape[0]
    ffh = pp['ff_w2'].shape[1]
    scale = dim_head ** -0.5

    sin_se, cos_se = _sinusoidal(time, D)
    t = _mm(sin_se, pp['time_w1a']) + _mm(cos_se, pp['time_w1b']) + pp['time_b1']
    temb = _mm(_gelu(t), pp['time_w2']) + pp['time_b2']
    tpe = _mm(_gelu(temb), pp['tpe_w']) + pp['tpe_b']
    cond = x_self_cond.reshape(B, -1).astype(F32)
    ctx = _mm(cond, pp['ctx_w']) + pp['ctx_b']
    h = (_mm(x.reshape(B * L, latent), pp['in_wa']).reshape(B, L, D)
         + (_mm(cond, pp['in_wb']) + pp['in_b'] + tpe)[:, None, :]
         + pp['pos_scaled'][:L][None, :, :])

    bias = pp['rel_bias'][:, :L, :L]
    keep = mask.astype(F32).reshape(B, 1, L) > 0.5
    for l in range(depth):
        hn = _layernorm(h.reshape(B * L, D), pp['sa_ng'][l], pp['sa_nb'][l])
        qkv = _mm(hn, pp['sa_wqkv'][l]).reshape(B, L, 3 * inner).astype(BF16)
        outs = []
        for hd in range(heads):
            q = qkv[:, :, hd * dim_head:(hd + 1) * dim_head]
            k = qkv[:, :, inner + hd * dim_head:inner + (hd + 1) * dim_head]
            v = qkv[:, :, 2 * inner + hd * dim_head:2 * inner + (hd + 1) * dim_head]
            dots = jnp.einsum('bld,bmd->blm', q, k, preferred_element_type=F32)
            dots = dots * scale + bias[hd][None, :, :]
            dots = jnp.where(keep, dots, _NEG)
            dots = dots - jnp.max(dots, axis=-1, keepdims=True)
            p = jnp.exp(dots)
            p = p / jnp.sum(p, axis=-1, keepdims=True)
            outs.append(jnp.einsum('blm,bmd->bld', p.astype(BF16), v,
                                   preferred_element_type=F32))
        o_all = jnp.concatenate(outs, axis=-1).reshape(B * L, inner)
        h = h + (_mm(o_all, pp['sa_wo'][l]) + pp['sa_bo'][l]).reshape(B, L, D)
        ca = _mm(_mm(ctx, pp['ca_wv'][l]), pp['ca_wo'][l]) + pp['ca_bo'][l]
        h = h + ca[:, None, :]
        hn2 = _layernorm(h.reshape(B * L, D), pp['ff_ng'][l], pp['ff_nb'][l])
        hid = _mm(hn2, pp['ff_w1'][l]) + pp['ff_b1'][l]
        act = hid[:, :ffh] * _gelu(hid[:, ffh:])
        h = h + (_mm(act, pp['ff_w2'][l]) + pp['ff_b2'][l]).reshape(B, L, D)

    hn3 = _layernorm(h.reshape(B * L, D), pp['norm_g'], pp['norm_b'])
    out = _mm(hn3, pp['out_w']) + pp['out_b']
    return out.reshape(B, L, latent)


# ------------------------------------------------------------------
# Main
# ------------------------------------------------------------------

if __name__ == "__main__":
    B, L = 2, 8
    latent_dim, context_dim = 16, 16
    tx_dim, depth, heads, dim_head = 32, 2, 4, 64      # x-transformers default dim_head=64
    max_seq_len = 64

    key = jax.random.PRNGKey(0)
    kp, kx, kc, kw = jax.random.split(key, 4)
    params = init_params(kp, tx_dim=tx_dim, depth=depth, heads=heads,
                         dim_head=dim_head, latent_dim=latent_dim,
                         context_dim=context_dim, max_seq_len=max_seq_len)
    packed = pack_params(params, tx_dim=tx_dim, latent_dim=latent_dim,
                         heads=heads, dim_head=dim_head, max_seq_len=max_seq_len)

    x = jax.random.normal(kx, (B, L, latent_dim), jnp.float32)
    x_self_cond = jax.random.normal(kc, (B, 1, context_dim), jnp.float32)
    time = jnp.array([5.0, 42.0], jnp.float32)
    mask = jnp.array([[True] * L,
                      [True] * 6 + [False] * 2])

    # Validation pass: temporarily use a NON-zero output projection so the full trunk is
    # compared against a pure-JAX reference (output_proj is zero-init per the module spec,
    # which would make the official output identically zero and hide trunk errors).
    packed_chk = dict(packed)
    packed_chk['out_w'] = (jax.random.normal(kw, (tx_dim, latent_dim), jnp.float32)
                           * 0.05).astype(BF16)
    got = diffusion_transformer_forward(packed_chk, x, mask, time, x_self_cond,
                                        tx_dim=tx_dim, heads=heads, dim_head=dim_head)
    want = reference_forward(packed_chk, x, mask, time, x_self_cond,
                             heads=heads, dim_head=dim_head)
    got, want = jax.block_until_ready((got, want))
    err = float(jnp.max(jnp.abs(got - want)))
    assert err < 5e-2, f"kernel vs reference mismatch: {err}"

    # Official forward with the module's zero-initialized output projection.
    out = diffusion_transformer_forward(packed, x, mask, time, x_self_cond,
                                        tx_dim=tx_dim, heads=heads, dim_head=dim_head)
    out = jax.block_until_ready(out)

    assert out.shape == (B, L, latent_dim), out.shape
    assert bool(jnp.all(jnp.isfinite(out)))
    print("KERNEL_OK")
</pallas_src>

<mosaic_0001>
module attributes {stable_mosaic.version = 11 : i64} {
  func.func @_fused_net_kernel(%arg0: i32, %arg1: memref<2x16xf32, #tpu.memory_space<vmem>>, %arg2: memref<2x16xf32, #tpu.memory_space<vmem>>, %arg3: memref<2x8x16xf32, #tpu.memory_space<vmem>>, %arg4: memref<2x16xf32, #tpu.memory_space<vmem>>, %arg5: memref<8x32xf32, #tpu.memory_space<vmem>>, %arg6: memref<2x1x8xf32, #tpu.memory_space<vmem>>, %arg7: memref<4x8x8xf32, #tpu.memory_space<vmem>>, %arg8: memref<16x128xbf16, #tpu.memory_space<vmem>>, %arg9: memref<16x128xbf16, #tpu.memory_space<vmem>>, %arg10: memref<1x128xf32, #tpu.memory_space<vmem>>, %arg11: memref<128x128xbf16, #tpu.memory_space<vmem>>, %arg12: memref<1x128xf32, #tpu.memory_space<vmem>>, %arg13: memref<128x32xbf16, #tpu.memory_space<vmem>>, %arg14: memref<1x32xf32, #tpu.memory_space<vmem>>, %arg15: memref<16x32xbf16, #tpu.memory_space<vmem>>, %arg16: memref<16x32xbf16, #tpu.memory_space<vmem>>, %arg17: memref<1x32xf32, #tpu.memory_space<vmem>>, %arg18: memref<16x32xbf16, #tpu.memory_space<vmem>>, %arg19: memref<1x32xf32, #tpu.memory_space<vmem>>, %arg20: memref<1x32xf32, #tpu.memory_space<vmem>>, %arg21: memref<1x32xf32, #tpu.memory_space<vmem>>, %arg22: memref<32x16xbf16, #tpu.memory_space<vmem>>, %arg23: memref<1x16xf32, #tpu.memory_space<vmem>>, %arg24: memref<1x1x32xf32, #tpu.memory_space<vmem>>, %arg25: memref<1x1x32xf32, #tpu.memory_space<vmem>>, %arg26: memref<1x32x768xbf16, #tpu.memory_space<vmem>>, %arg27: memref<1x256x32xbf16, #tpu.memory_space<vmem>>, %arg28: memref<1x1x32xf32, #tpu.memory_space<vmem>>, %arg29: memref<1x32x256xbf16, #tpu.memory_space<vmem>>, %arg30: memref<1x256x32xbf16, #tpu.memory_space<vmem>>, %arg31: memref<1x1x32xf32, #tpu.memory_space<vmem>>, %arg32: memref<1x1x32xf32, #tpu.memory_space<vmem>>, %arg33: memref<1x1x32xf32, #tpu.memory_space<vmem>>, %arg34: memref<1x32x256xbf16, #tpu.memory_space<vmem>>, %arg35: memref<1x1x256xf32, #tpu.memory_space<vmem>>, %arg36: memref<1x128x32xbf16, #tpu.memory_space<vmem>>, %arg37: memref<1x1x32xf32, #tpu.memory_space<vmem>>, %arg38: memref<2x8x16xf32, #tpu.memory_space<vmem>>, %arg39: memref<2x8x32xf32, #tpu.memory_space<vmem>>, %arg40: memref<2x32xf32, #tpu.memory_space<vmem>>) attributes {dimension_semantics = [#tpu.dimension_semantics<arbitrary>], iteration_bounds = array<i64: 2>, scalar_prefetch = 0 : i64, scratch_operands = 2 : i64, tpu.core_type = #tpu.core_type<tc>, window_params = [{pipeline_mode = #tpu.pipeline_mode<synchronous>, transform_indices = @transform_0, window_bounds = array<i64: 2, 16>}, {pipeline_mode = #tpu.pipeline_mode<synchronous>, transform_indices = @transform_1, window_bounds = array<i64: 2, 16>}, {pipeline_mode = #tpu.pipeline_mode<synchronous>, transform_indices = @transform_2, window_bounds = array<i64: 2, 8, 16>}, {pipeline_mode = #tpu.pipeline_mode<synchronous>, transform_indices = @transform_3, window_bounds = array<i64: 2, 16>}, {pipeline_mode = #tpu.pipeline_mode<synchronous>, transform_indices = @transform_4, window_bounds = array<i64: 8, 32>}, {pipeline_mode = #tpu.pipeline_mode<synchronous>, transform_indices = @transform_5, window_bounds = array<i64: 2, 1, 8>}, {pipeline_mode = #tpu.pipeline_mode<synchronous>, transform_indices = @transform_6, window_bounds = array<i64: 4, 8, 8>}, {pipeline_mode = #tpu.pipeline_mode<synchronous>, transform_indices = @transform_7, window_bounds = array<i64: 16, 128>}, {pipeline_mode = #tpu.pipeline_mode<synchronous>, transform_indices = @transform_8, window_bounds = array<i64: 16, 128>}, {pipeline_mode = #tpu.pipeline_mode<synchronous>, transform_indices = @transform_9, window_bounds = array<i64: 1, 128>}, {pipeline_mode = #tpu.pipeline_mode<synchronous>, transform_indices = @transform_10, window_bounds = array<i64: 128, 128>}, {pipeline_mode = #tpu.pipeline_mode<synchronous>, transform_indices = @transform_11, window_bounds = array<i64: 1, 128>}, {pipeline_mode = #tpu.pipeline_mode<synchronous>, transform_indices = @transform_12, window_bounds = array<i64: 128, 32>}, {pipeline_mode = #tpu.pipeline_mode<synchronous>, transform_indices = @transform_13, window_bounds = array<i64: 1, 32>}, {pipeline_mode = #tpu.pipeline_mode<synchronous>, transform_indices = @transform_14, window_bounds = array<i64: 16, 32>}, {pipeline_mode = #tpu.pipeline_mode<synchronous>, transform_indices = @transform_15, window_bounds = array<i64: 16, 32>}, {pipeline_mode = #tpu.pipeline_mode<synchronous>, transform_indices = @transform_16, window_bounds = array<i64: 1, 32>}, {pipeline_mode = #tpu.pipeline_mode<synchronous>, transform_indices = @transform_17, window_bounds = array<i64: 16, 32>}, {pipeline_mode = #tpu.pipeline_mode<synchronous>, transform_indices = @transform_18, window_bounds = array<i64: 1, 32>}, {pipeline_mode = #tpu.pipeline_mode<synchronous>, transform_indices = @transform_19, window_bounds = array<i64: 1, 32>}, {pipeline_mode = #tpu.pipeline_mode<synchronous>, transform_indices = @transform_20, window_bounds = array<i64: 1, 32>}, {pipeline_mode = #tpu.pipeline_mode<synchronous>, transform_indices = @transform_21, window_bounds = array<i64: 32, 16>}, {pipeline_mode = #tpu.pipeline_mode<synchronous>, transform_indices = @transform_22, window_bounds = array<i64: 1, 16>}, {transform_indices = @transform_23, window_bounds = array<i64: 1, 1, 32>}, {transform_indices = @transform_24, window_bounds = array<i64: 1, 1, 32>}, {transform_indices = @transform_25, window_bounds = array<i64: 1, 32, 768>}, {transform_indices = @transform_26, window_bounds = array<i64: 1, 256, 32>}, {transform_indices = @transform_27, window_bounds = array<i64: 1, 1, 32>}, {transform_indices = @transform_28, window_bounds = array<i64: 1, 32, 256>}, {transform_indices = @transform_29, window_bounds = array<i64: 1, 256, 32>}, {transform_indices = @transform_30, window_bounds = array<i64: 1, 1, 32>}, {transform_indices = @transform_31, window_bounds = array<i64: 1, 1, 32>}, {transform_indices = @transform_32, window_bounds = array<i64: 1, 1, 32>}, {transform_indices = @transform_33, window_bounds = array<i64: 1, 32, 256>}, {transform_indices = @transform_34, window_bounds = array<i64: 1, 1, 256>}, {transform_indices = @transform_35, window_bounds = array<i64: 1, 128, 32>}, {transform_indices = @transform_36, window_bounds = array<i64: 1, 1, 32>}, {pipeline_mode = #tpu.pipeline_mode<synchronous>, transform_indices = @transform_37, window_bounds = array<i64: 2, 8, 16>}]} {
    %c0_i32 = arith.constant 0 : i32
    %0 = arith.cmpi eq, %arg0, %c0_i32 : i32
    %1 = arith.extui %0 : i1 to i32
    %c0_i32_0 = arith.constant 0 : i32
    %2 = arith.cmpi ne, %1, %c0_i32_0 : i32
    scf.if %2 {
      %c0_101 = arith.constant 0 : index
      %c0_102 = arith.constant 0 : index
      %236 = vector.load %arg1[%c0_101, %c0_102] : memref<2x16xf32, #tpu.memory_space<vmem>>, vector<2x16xf32>
      %237 = arith.truncf %236 : vector<2x16xf32> to vector<2x16xbf16>
      %c0_103 = arith.constant 0 : index
      %c0_104 = arith.constant 0 : index
      %238 = vector.load %arg8[%c0_103, %c0_104] : memref<16x128xbf16, #tpu.memory_space<vmem>>, vector<16x128xbf16>
      %cst_105 = arith.constant dense<0.000000e+00> : vector<2x128xf32>
      %239 = tpu.matmul %237, %238, %cst_105 {dimension_numbers = #tpu.dot_dimension_numbers<[1], [0], [0], [1], [0, 0, 1, 1], [], []>} : vector<2x16xbf16>, vector<16x128xbf16>, vector<2x128xf32> -> vector<2x128xf32>
      %c0_106 = arith.constant 0 : index
      %c0_107 = arith.constant 0 : index
      %240 = vector.load %arg2[%c0_106, %c0_107] : memref<2x16xf32, #tpu.memory_space<vmem>>, vector<2x16xf32>
      %241 = arith.truncf %240 : vector<2x16xf32> to vector<2x16xbf16>
      %c0_108 = arith.constant 0 : index
      %c0_109 = arith.constant 0 : index
      %242 = vector.load %arg9[%c0_108, %c0_109] : memref<16x128xbf16, #tpu.memory_space<vmem>>, vector<16x128xbf16>
      %cst_110 = arith.constant dense<0.000000e+00> : vector<2x128xf32>
      %243 = tpu.matmul %241, %242, %cst_110 {dimension_numbers = #tpu.dot_dimension_numbers<[1], [0], [0], [1], [0, 0, 1, 1], [], []>} : vector<2x16xbf16>, vector<16x128xbf16>, vector<2x128xf32> -> vector<2x128xf32>
      %244 = arith.addf %239, %243 : vector<2x128xf32>
      %c0_111 = arith.constant 0 : index
      %c0_112 = arith.constant 0 : index
      %245 = vector.load %arg10[%c0_111, %c0_112] : memref<1x128xf32, #tpu.memory_space<vmem>>, vector<1x128xf32>
      %246 = vector.broadcast %245 : vector<1x128xf32> to vector<2x128xf32>
      %247 = arith.addf %244, %246 : vector<2x128xf32>
      %cst_113 = arith.constant 5.000000e-01 : f32
      %248 = vector.broadcast %cst_113 : f32 to vector<2x128xf32>
      %249 = arith.mulf %248, %247 : vector<2x128xf32>
      %cst_114 = arith.constant 4.471500e-02 : f32
      %250 = vector.broadcast %cst_114 : f32 to vector<2x128xf32>
      %251 = arith.mulf %250, %247 : vector<2x128xf32>
      %252 = arith.mulf %251, %247 : vector<2x128xf32>
      %253 = arith.mulf %252, %247 : vector<2x128xf32>
      %254 = arith.addf %247, %253 : vector<2x128xf32>
      %cst_115 = arith.constant 0.797884583 : f32
      %255 = vector.broadcast %cst_115 : f32 to vector<2x128xf32>
      %256 = arith.mulf %255, %254 : vector<2x128xf32>
      %257 = math.tanh %256 : vector<2x128xf32>
      %cst_116 = arith.constant 1.000000e+00 : f32
      %258 = vector.broadcast %cst_116 : f32 to vector<2x128xf32>
      %259 = arith.addf %258, %257 : vector<2x128xf32>
      %260 = arith.mulf %249, %259 : vector<2x128xf32>
      %261 = arith.truncf %260 : vector<2x128xf32> to vector<2x128xbf16>
      %c0_117 = arith.constant 0 : index
      %c0_118 = arith.constant 0 : index
      %262 = vector.load %arg11[%c0_117, %c0_118] : memref<128x128xbf16, #tpu.memory_space<vmem>>, vector<128x128xbf16>
      %cst_119 = arith.constant dense<0.000000e+00> : vector<2x128xf32>
      %263 = tpu.matmul %261, %262, %cst_119 {dimension_numbers = #tpu.dot_dimension_numbers<[1], [0], [0], [1], [0, 0, 1, 1], [], []>} : vector<2x128xbf16>, vector<128x128xbf16>, vector<2x128xf32> -> vector<2x128xf32>
      %c0_120 = arith.constant 0 : index
      %c0_121 = arith.constant 0 : index
      %264 = vector.load %arg12[%c0_120, %c0_121] : memref<1x128xf32, #tpu.memory_space<vmem>>, vector<1x128xf32>
      %265 = vector.broadcast %264 : vector<1x128xf32> to vector<2x128xf32>
      %266 = arith.addf %263, %265 : vector<2x128xf32>
      %cst_122 = arith.constant 5.000000e-01 : f32
      %267 = vector.broadcast %cst_122 : f32 to vector<2x128xf32>
      %268 = arith.mulf %267, %266 : vector<2x128xf32>
      %cst_123 = arith.constant 4.471500e-02 : f32
      %269 = vector.broadcast %cst_123 : f32 to vector<2x128xf32>
      %270 = arith.mulf %269, %266 : vector<2x128xf32>
      %271 = arith.mulf %270, %266 : vector<2x128xf32>
      %272 = arith.mulf %271, %266 : vector<2x128xf32>
      %273 = arith.addf %266, %272 : vector<2x128xf32>
      %cst_124 = arith.constant 0.797884583 : f32
      %274 = vector.broadcast %cst_124 : f32 to vector<2x128xf32>
      %275 = arith.mulf %274, %273 : vector<2x128xf32>
      %276 = math.tanh %275 : vector<2x128xf32>
      %cst_125 = arith.constant 1.000000e+00 : f32
      %277 = vector.broadcast %cst_125 : f32 to vector<2x128xf32>
      %278 = arith.addf %277, %276 : vector<2x128xf32>
      %279 = arith.mulf %268, %278 : vector<2x128xf32>
      %280 = arith.truncf %279 : vector<2x128xf32> to vector<2x128xbf16>
      %c0_126 = arith.constant 0 : index
      %c0_127 = arith.constant 0 : index
      %281 = vector.load %arg13[%c0_126, %c0_127] : memref<128x32xbf16, #tpu.memory_space<vmem>>, vector<128x32xbf16>
      %cst_128 = arith.constant dense<0.000000e+00> : vector<2x32xf32>
      %282 = tpu.matmul %280, %281, %cst_128 {dimension_numbers = #tpu.dot_dimension_numbers<[1], [0], [0], [1], [0, 0, 1, 1], [], []>} : vector<2x128xbf16>, vector<128x32xbf16>, vector<2x32xf32> -> vector<2x32xf32>
      %c0_129 = arith.constant 0 : index
      %c0_130 = arith.constant 0 : index
      %283 = vector.load %arg14[%c0_129, %c0_130] : memref<1x32xf32, #tpu.memory_space<vmem>>, vector<1x32xf32>
      %284 = vector.broadcast %283 : vector<1x32xf32> to vector<2x32xf32>
      %285 = arith.addf %282, %284 : vector<2x32xf32>
      %c0_131 = arith.constant 0 : index
      %c0_132 = arith.constant 0 : index
      %286 = vector.load %arg4[%c0_131, %c0_132] : memref<2x16xf32, #tpu.memory_space<vmem>>, vector<2x16xf32>
      %287 = arith.truncf %286 : vector<2x16xf32> to vector<2x16xbf16>
      %c0_133 = arith.constant 0 : index
      %c0_134 = arith.constant 0 : index
      %288 = vector.load %arg18[%c0_133, %c0_134] : memref<16x32xbf16, #tpu.memory_space<vmem>>, vector<16x32xbf16>
      %cst_135 = arith.constant dense<0.000000e+00> : vector<2x32xf32>
      %289 = tpu.matmul %287, %288, %cst_135 {dimension_numbers = #tpu.dot_dimension_numbers<[1], [0], [0], [1], [0, 0, 1, 1], [], []>} : vector<2x16xbf16>, vector<16x32xbf16>, vector<2x32xf32> -> vector<2x32xf32>
      %c0_136 = arith.constant 0 : index
      %c0_137 = arith.constant 0 : index
      %290 = vector.load %arg19[%c0_136, %c0_137] : memref<1x32xf32, #tpu.memory_space<vmem>>, vector<1x32xf32>
      %291 = vector.broadcast %290 : vector<1x32xf32> to vector<2x32xf32>
      %292 = arith.addf %289, %291 : vector<2x32xf32>
      %c0_138 = arith.constant 0 : index
      %c0_139 = arith.constant 0 : index
      %293 = vector.load %arg40[%c0_138, %c0_139] : memref<2x32xf32, #tpu.memory_space<vmem>>, vector<2x32xf32>
      tpu.vector_store %arg40[%c0_138, %c0_139], %292 {strides = array<i32>} : memref<2x32xf32, #tpu.memory_space<vmem>>, vector<2x32xf32>,
      %c0_140 = arith.constant 0 : index
      %c0_141 = arith.constant 0 : index
      %c0_142 = arith.constant 0 : index
      %294 = vector.load %arg3[%c0_140, %c0_141, %c0_142] : memref<2x8x16xf32, #tpu.memory_space<vmem>>, vector<2x8x16xf32>
      %295 = vector.shape_cast %294 : vector<2x8x16xf32> to vector<16x16xf32>
      %296 = arith.truncf %295 : vector<16x16xf32> to vector<16x16xbf16>
      %c0_143 = arith.constant 0 : index
      %c0_144 = arith.constant 0 : index
      %297 = vector.load %arg15[%c0_143, %c0_144] : memref<16x32xbf16, #tpu.memory_space<vmem>>, vector<16x32xbf16>
      %cst_145 = arith.constant dense<0.000000e+00> : vector<16x32xf32>
      %298 = tpu.matmul %296, %297, %cst_145 {dimension_numbers = #tpu.dot_dimension_numbers<[1], [0], [0], [1], [0, 0, 1, 1], [], []>} : vector<16x16xbf16>, vector<16x32xbf16>, vector<16x32xf32> -> vector<16x32xf32>
      %c0_146 = arith.constant 0 : index
      %c0_147 = arith.constant 0 : index
      %299 = vector.load %arg16[%c0_146, %c0_147] : memref<16x32xbf16, #tpu.memory_space<vmem>>, vector<16x32xbf16>
      %cst_148 = arith.constant dense<0.000000e+00> : vector<2x32xf32>
      %300 = tpu.matmul %287, %299, %cst_148 {dimension_numbers = #tpu.dot_dimension_numbers<[1], [0], [0], [1], [0, 0, 1, 1], [], []>} : vector<2x16xbf16>, vector<16x32xbf16>, vector<2x32xf32> -> vector<2x32xf32>
      %c0_149 = arith.constant 0 : index
      %c0_150 = arith.constant 0 : index
      %301 = vector.load %arg17[%c0_149, %c0_150] : memref<1x32xf32, #tpu.memory_space<vmem>>, vector<1x32xf32>
      %302 = vector.broadcast %301 : vector<1x32xf32> to vector<2x32xf32>
      %303 = arith.addf %300, %302 : vector<2x32xf32>
      %304 = arith.addf %303, %285 : vector<2x32xf32>
      %305 = vector.shape_cast %298 : vector<16x32xf32> to vector<2x8x32xf32>
      %306 = vector.shape_cast %304 : vector<2x32xf32> to vector<2x1x32xf32>
      %307 = vector.broadcast %306 : vector<2x1x32xf32> to vector<2x8x32xf32>
      %308 = arith.addf %305, %307 : vector<2x8x32xf32>
      %c0_151 = arith.constant 0 : index
      %c0_152 = arith.constant 0 : index
      %309 = vector.load %arg5[%c0_151, %c0_152] : memref<8x32xf32, #tpu.memory_space<vmem>>, vector<8x32xf32>
      %310 = vector.shape_cast %309 : vector<8x32xf32> to vector<1x8x32xf32>
      %311 = vector.broadcast %310 : vector<1x8x32xf32> to vector<2x8x32xf32>
      %312 = arith.addf %308, %311 : vector<2x8x32xf32>
      %c0_153 = arith.constant 0 : index
      %c0_154 = arith.constant 0 : index
      %c0_155 = arith.constant 0 : index
      %313 = vector.load %arg39[%c0_153, %c0_154, %c0_155] : memref<2x8x32xf32, #tpu.memory_space<vmem>>, vector<2x8x32xf32>
      tpu.vector_store %arg39[%c0_153, %c0_154, %c0_155], %312 {strides = array<i32>} : memref<2x8x32xf32, #tpu.memory_space<vmem>>, vector<2x8x32xf32>,
    } else {
    }
    %c0 = arith.constant 0 : index
    %c0_1 = arith.constant 0 : index
    %c0_2 = arith.constant 0 : index
    %3 = vector.load %arg39[%c0, %c0_1, %c0_2] : memref<2x8x32xf32, #tpu.memory_space<vmem>>, vector<2x8x32xf32>
    %c0_3 = arith.constant 0 : index
    %c0_4 = arith.constant 0 : index
    %c0_5 = arith.constant 0 : index
    %4 = vector.load %arg6[%c0_3, %c0_4, %c0_5] : memref<2x1x8xf32, #tpu.memory_space<vmem>>, vector<2x1x8xf32>
    %cst = arith.constant 5.000000e-01 : f32
    %5 = vector.broadcast %cst : f32 to vector<2x1x8xf32>
    %6 = arith.cmpf ogt, %4, %5 : vector<2x1x8xf32>
    %7 = vector.shape_cast %6 : vector<2x1x8xi1> to vector<2x1x8xi1>
    %8 = vector.broadcast %7 : vector<2x1x8xi1> to vector<2x8x8xi1>
    %c0_6 = arith.constant 0 : index
    %c0_7 = arith.constant 0 : index
    %c0_8 = arith.constant 0 : index
    %9 = vector.load %arg7[%c0_6, %c0_7, %c0_8] : memref<4x8x8xf32, #tpu.memory_space<vmem>>, vector<4x8x8xf32>
    %10 = vector.shape_cast %3 : vector<2x8x32xf32> to vector<16x32xf32>
    %c0_9 = arith.constant 0 : index
    %c0_10 = arith.constant 0 : index
    %c0_11 = arith.constant 0 : index
    %11 = vector.load %arg24[%c0_9, %c0_10, %c0_11] : memref<1x1x32xf32, #tpu.memory_space<vmem>>, vector<1x1x32xf32>
    %12 = vector.shape_cast %11 : vector<1x1x32xf32> to vector<1x32xf32>
    %c0_12 = arith.constant 0 : index
    %c0_13 = arith.constant 0 : index
    %c0_14 = arith.constant 0 : index
    %13 = vector.load %arg25[%c0_12, %c0_13, %c0_14] : memref<1x1x32xf32, #tpu.memory_space<vmem>>, vector<1x1x32xf32>
    %14 = vector.shape_cast %13 : vector<1x1x32xf32> to vector<1x32xf32>
    %cst_15 = arith.constant dense<0.000000e+00> : vector<16xf32>
    %15 = vector.multi_reduction <add>, %10, %cst_15 [1] : vector<16x32xf32> to vector<16xf32>
    %16 = vector.shape_cast %15 : vector<16xf32> to vector<16x1xf32>
    %cst_16 = arith.constant 3.200000e+01 : f32
    %17 = vector.broadcast %cst_16 : f32 to vector<16x1xf32>
    %18 = arith.divf %16, %17 : vector<16x1xf32>
    %19 = vector.broadcast %18 : vector<16x1xf32> to vector<16x32xf32>
    %20 = arith.subf %10, %19 : vector<16x32xf32>
    %21 = vector.broadcast %18 : vector<16x1xf32> to vector<16x32xf32>
    %22 = arith.subf %10, %21 : vector<16x32xf32>
    %23 = arith.mulf %20, %22 : vector<16x32xf32>
    %cst_17 = arith.constant dense<0.000000e+00> : vector<16xf32>
    %24 = vector.multi_reduction <add>, %23, %cst_17 [1] : vector<16x32xf32> to vector<16xf32>
    %25 = vector.shape_cast %24 : vector<16xf32> to vector<16x1xf32>
    %cst_18 = arith.constant 3.200000e+01 : f32
    %26 = vector.broadcast %cst_18 : f32 to vector<16x1xf32>
    %27 = arith.divf %25, %26 : vector<16x1xf32>
    %28 = vector.broadcast %18 : vector<16x1xf32> to vector<16x32xf32>
    %29 = arith.subf %10, %28 : vector<16x32xf32>
    %cst_19 = arith.constant 9.99999974E-6 : f32
    %30 = vector.broadcast %cst_19 : f32 to vector<16x1xf32>
    %31 = arith.addf %27, %30 : vector<16x1xf32>
    %32 = math.rsqrt %31 : vector<16x1xf32>
    %33 = vector.broadcast %32 : vector<16x1xf32> to vector<16x32xf32>
    %34 = arith.mulf %29, %33 : vector<16x32xf32>
    %35 = vector.broadcast %12 : vector<1x32xf32> to vector<16x32xf32>
    %36 = arith.mulf %34, %35 : vector<16x32xf32>
    %37 = vector.broadcast %14 : vector<1x32xf32> to vector<16x32xf32>
    %38 = arith.addf %36, %37 : vector<16x32xf32>
    %39 = arith.truncf %38 : vector<16x32xf32> to vector<16x32xbf16>
    %c0_20 = arith.constant 0 : index
    %c0_21 = arith.constant 0 : index
    %c0_22 = arith.constant 0 : index
    %40 = vector.load %arg26[%c0_20, %c0_21, %c0_22] : memref<1x32x768xbf16, #tpu.memory_space<vmem>>, vector<1x32x768xbf16>
    %41 = vector.shape_cast %40 : vector<1x32x768xbf16> to vector<32x768xbf16>
    %cst_23 = arith.constant dense<0.000000e+00> : vector<16x768xf32>
    %42 = tpu.matmul %39, %41, %cst_23 {dimension_numbers = #tpu.dot_dimension_numbers<[1], [0], [0], [1], [0, 0, 1, 1], [], []>} : vector<16x32xbf16>, vector<32x768xbf16>, vector<16x768xf32> -> vector<16x768xf32>
    %43 = vector.shape_cast %42 : vector<16x768xf32> to vector<2x8x768xf32>
    %44 = arith.truncf %43 : vector<2x8x768xf32> to vector<2x8x768xbf16>
    %45 = vector.extract_strided_slice %44 {offsets = [0, 0, 0], sizes = [2, 8, 64], strides = [1, 1, 1]} : vector<2x8x768xbf16> to vector<2x8x64xbf16>
    %46 = vector.extract_strided_slice %44 {offsets = [0, 0, 256], sizes = [2, 8, 64], strides = [1, 1, 1]} : vector<2x8x768xbf16> to vector<2x8x64xbf16>
    %47 = vector.extract_strided_slice %44 {offsets = [0, 0, 512], sizes = [2, 8, 64], strides = [1, 1, 1]} : vector<2x8x768xbf16> to vector<2x8x64xbf16>
    %cst_24 = arith.constant dense<0.000000e+00> : vector<2x8x8xf32>
    %48 = tpu.matmul %45, %46, %cst_24 {dimension_numbers = #tpu.dot_dimension_numbers<[2], [2], [1], [1], [0, 0, 0, 1, 1, 1], [0], [0]>} : vector<2x8x64xbf16>, vector<2x8x64xbf16>, vector<2x8x8xf32> -> vector<2x8x8xf32>
    %cst_25 = arith.constant 1.250000e-01 : f32
    %49 = vector.broadcast %cst_25 : f32 to vector<2x8x8xf32>
    %50 = arith.mulf %48, %49 : vector<2x8x8xf32>
    %51 = vector.extract_strided_slice %9 {offsets = [0, 0, 0], sizes = [1, 8, 8], strides = [1, 1, 1]} : vector<4x8x8xf32> to vector<1x8x8xf32>
    %52 = vector.shape_cast %51 : vector<1x8x8xf32> to vector<8x8xf32>
    %53 = vector.shape_cast %52 : vector<8x8xf32> to vector<1x8x8xf32>
    %54 = vector.broadcast %53 : vector<1x8x8xf32> to vector<2x8x8xf32>
    %55 = arith.addf %50, %54 : vector<2x8x8xf32>
    %cst_26 = arith.constant -3.40282347E+38 : f32
    %56 = vector.broadcast %cst_26 : f32 to vector<2x8x8xf32>
    %57 = arith.select %8, %55, %56 : vector<2x8x8xi1>, vector<2x8x8xf32>
    %cst_27 = arith.constant dense<0xFF800000> : vector<2x8xf32>
    %58 = vector.multi_reduction <maximumf>, %57, %cst_27 [2] : vector<2x8x8xf32> to vector<2x8xf32>
    %59 = vector.shape_cast %58 : vector<2x8xf32> to vector<2x8x1xf32>
    %60 = vector.broadcast %59 : vector<2x8x1xf32> to vector<2x8x8xf32>
    %61 = arith.subf %57, %60 : vector<2x8x8xf32>
    %62 = math.exp %61 : vector<2x8x8xf32>
    %cst_28 = arith.constant dense<0.000000e+00> : vector<2x8xf32>
    %63 = vector.multi_reduction <add>, %62, %cst_28 [2] : vector<2x8x8xf32> to vector<2x8xf32>
    %64 = vector.shape_cast %63 : vector<2x8xf32> to vector<2x8x1xf32>
    %65 = vector.broadcast %64 : vector<2x8x1xf32> to vector<2x8x8xf32>
    %66 = arith.divf %62, %65 : vector<2x8x8xf32>
    %67 = arith.truncf %66 : vector<2x8x8xf32> to vector<2x8x8xbf16>
    %cst_29 = arith.constant dense<0.000000e+00> : vector<2x8x64xf32>
    %68 = tpu.matmul %67, %47, %cst_29 {dimension_numbers = #tpu.dot_dimension_numbers<[2], [1], [1], [2], [0, 0, 0, 1, 1, 2], [0], [0]>} : vector<2x8x8xbf16>, vector<2x8x64xbf16>, vector<2x8x64xf32> -> vector<2x8x64xf32>
    %69 = vector.extract_strided_slice %44 {offsets = [0, 0, 64], sizes = [2, 8, 64], strides = [1, 1, 1]} : vector<2x8x768xbf16> to vector<2x8x64xbf16>
    %70 = vector.extract_strided_slice %44 {offsets = [0, 0, 320], sizes = [2, 8, 64], strides = [1, 1, 1]} : vector<2x8x768xbf16> to vector<2x8x64xbf16>
    %71 = vector.extract_strided_slice %44 {offsets = [0, 0, 576], sizes = [2, 8, 64], strides = [1, 1, 1]} : vector<2x8x768xbf16> to vector<2x8x64xbf16>
    %cst_30 = arith.constant dense<0.000000e+00> : vector<2x8x8xf32>
    %72 = tpu.matmul %69, %70, %cst_30 {dimension_numbers = #tpu.dot_dimension_numbers<[2], [2], [1], [1], [0, 0, 0, 1, 1, 1], [0], [0]>} : vector<2x8x64xbf16>, vector<2x8x64xbf16>, vector<2x8x8xf32> -> vector<2x8x8xf32>
    %cst_31 = arith.constant 1.250000e-01 : f32
    %73 = vector.broadcast %cst_31 : f32 to vector<2x8x8xf32>
    %74 = arith.mulf %72, %73 : vector<2x8x8xf32>
    %75 = vector.extract_strided_slice %9 {offsets = [1, 0, 0], sizes = [1, 8, 8], strides = [1, 1, 1]} : vector<4x8x8xf32> to vector<1x8x8xf32>
    %76 = vector.shape_cast %75 : vector<1x8x8xf32> to vector<8x8xf32>
    %77 = vector.shape_cast %76 : vector<8x8xf32> to vector<1x8x8xf32>
    %78 = vector.broadcast %77 : vector<1x8x8xf32> to vector<2x8x8xf32>
    %79 = arith.addf %74, %78 : vector<2x8x8xf32>
    %cst_32 = arith.constant -3.40282347E+38 : f32
    %80 = vector.broadcast %cst_32 : f32 to vector<2x8x8xf32>
    %81 = arith.select %8, %79, %80 : vector<2x8x8xi1>, vector<2x8x8xf32>
    %cst_33 = arith.constant dense<0xFF800000> : vector<2x8xf32>
    %82 = vector.multi_reduction <maximumf>, %81, %cst_33 [2] : vector<2x8x8xf32> to vector<2x8xf32>
    %83 = vector.shape_cast %82 : vector<2x8xf32> to vector<2x8x1xf32>
    %84 = vector.broadcast %83 : vector<2x8x1xf32> to vector<2x8x8xf32>
    %85 = arith.subf %81, %84 : vector<2x8x8xf32>
    %86 = math.exp %85 : vector<2x8x8xf32>
    %cst_34 = arith.constant dense<0.000000e+00> : vector<2x8xf32>
    %87 = vector.multi_reduction <add>, %86, %cst_34 [2] : vector<2x8x8xf32> to vector<2x8xf32>
    %88 = vector.shape_cast %87 : vector<2x8xf32> to vector<2x8x1xf32>
    %89 = vector.broadcast %88 : vector<2x8x1xf32> to vector<2x8x8xf32>
    %90 = arith.divf %86, %89 : vector<2x8x8xf32>
    %91 = arith.truncf %90 : vector<2x8x8xf32> to vector<2x8x8xbf16>
    %cst_35 = arith.constant dense<0.000000e+00> : vector<2x8x64xf32>
    %92 = tpu.matmul %91, %71, %cst_35 {dimension_numbers = #tpu.dot_dimension_numbers<[2], [1], [1], [2], [0, 0, 0, 1, 1, 2], [0], [0]>} : vector<2x8x8xbf16>, vector<2x8x64xbf16>, vector<2x8x64xf32> -> vector<2x8x64xf32>
    %93 = vector.extract_strided_slice %44 {offsets = [0, 0, 128], sizes = [2, 8, 64], strides = [1, 1, 1]} : vector<2x8x768xbf16> to vector<2x8x64xbf16>
    %94 = vector.extract_strided_slice %44 {offsets = [0, 0, 384], sizes = [2, 8, 64], strides = [1, 1, 1]} : vector<2x8x768xbf16> to vector<2x8x64xbf16>
    %95 = vector.extract_strided_slice %44 {offsets = [0, 0, 640], sizes = [2, 8, 64], strides = [1, 1, 1]} : vector<2x8x768xbf16> to vector<2x8x64xbf16>
    %cst_36 = arith.constant dense<0.000000e+00> : vector<2x8x8xf32>
    %96 = tpu.matmul %93, %94, %cst_36 {dimension_numbers = #tpu.dot_dimension_numbers<[2], [2], [1], [1], [0, 0, 0, 1, 1, 1], [0], [0]>} : vector<2x8x64xbf16>, vector<2x8x64xbf16>, vector<2x8x8xf32> -> vector<2x8x8xf32>
    %cst_37 = arith.constant 1.250000e-01 : f32
    %97 = vector.broadcast %cst_37 : f32 to vector<2x8x8xf32>
    %98 = arith.mulf %96, %97 : vector<2x8x8xf32>
    %99 = vector.extract_strided_slice %9 {offsets = [2, 0, 0], sizes = [1, 8, 8], strides = [1, 1, 1]} : vector<4x8x8xf32> to vector<1x8x8xf32>
    %100 = vector.shape_cast %99 : vector<1x8x8xf32> to vector<8x8xf32>
    %101 = vector.shape_cast %100 : vector<8x8xf32> to vector<1x8x8xf32>
    %102 = vector.broadcast %101 : vector<1x8x8xf32> to vector<2x8x8xf32>
    %103 = arith.addf %98, %102 : vector<2x8x8xf32>
    %cst_38 = arith.constant -3.40282347E+38 : f32
    %104 = vector.broadcast %cst_38 : f32 to vector<2x8x8xf32>
    %105 = arith.select %8, %103, %104 : vector<2x8x8xi1>, vector<2x8x8xf32>
    %cst_39 = arith.constant dense<0xFF800000> : vector<2x8xf32>
    %106 = vector.multi_reduction <maximumf>, %105, %cst_39 [2] : vector<2x8x8xf32> to vector<2x8xf32>
    %107 = vector.shape_cast %106 : vector<2x8xf32> to vector<2x8x1xf32>
    %108 = vector.broadcast %107 : vector<2x8x1xf32> to vector<2x8x8xf32>
    %109 = arith.subf %105, %108 : vector<2x8x8xf32>
    %110 = math.exp %109 : vector<2x8x8xf32>
    %cst_40 = arith.constant dense<0.000000e+00> : vector<2x8xf32>
    %111 = vector.multi_reduction <add>, %110, %cst_40 [2] : vector<2x8x8xf32> to vector<2x8xf32>
    %112 = vector.shape_cast %111 : vector<2x8xf32> to vector<2x8x1xf32>
    %113 = vector.broadcast %112 : vector<2x8x1xf32> to vector<2x8x8xf32>
    %114 = arith.divf %110, %113 : vector<2x8x8xf32>
    %115 = arith.truncf %114 : vector<2x8x8xf32> to vector<2x8x8xbf16>
    %cst_41 = arith.constant dense<0.000000e+00> : vector<2x8x64xf32>
    %116 = tpu.matmul %115, %95, %cst_41 {dimension_numbers = #tpu.dot_dimension_numbers<[2], [1], [1], [2], [0, 0, 0, 1, 1, 2], [0], [0]>} : vector<2x8x8xbf16>, vector<2x8x64xbf16>, vector<2x8x64xf32> -> vector<2x8x64xf32>
    %117 = vector.extract_strided_slice %44 {offsets = [0, 0, 192], sizes = [2, 8, 64], strides = [1, 1, 1]} : vector<2x8x768xbf16> to vector<2x8x64xbf16>
    %118 = vector.extract_strided_slice %44 {offsets = [0, 0, 448], sizes = [2, 8, 64], strides = [1, 1, 1]} : vector<2x8x768xbf16> to vector<2x8x64xbf16>
    %119 = vector.extract_strided_slice %44 {offsets = [0, 0, 704], sizes = [2, 8, 64], strides = [1, 1, 1]} : vector<2x8x768xbf16> to vector<2x8x64xbf16>
    %cst_42 = arith.constant dense<0.000000e+00> : vector<2x8x8xf32>
    %120 = tpu.matmul %117, %118, %cst_42 {dimension_numbers = #tpu.dot_dimension_numbers<[2], [2], [1], [1], [0, 0, 0, 1, 1, 1], [0], [0]>} : vector<2x8x64xbf16>, vector<2x8x64xbf16>, vector<2x8x8xf32> -> vector<2x8x8xf32>
    %cst_43 = arith.constant 1.250000e-01 : f32
    %121 = vector.broadcast %cst_43 : f32 to vector<2x8x8xf32>
    %122 = arith.mulf %120, %121 : vector<2x8x8xf32>
    %123 = vector.extract_strided_slice %9 {offsets = [3, 0, 0], sizes = [1, 8, 8], strides = [1, 1, 1]} : vector<4x8x8xf32> to vector<1x8x8xf32>
    %124 = vector.shape_cast %123 : vector<1x8x8xf32> to vector<8x8xf32>
    %125 = vector.shape_cast %124 : vector<8x8xf32> to vector<1x8x8xf32>
    %126 = vector.broadcast %125 : vector<1x8x8xf32> to vector<2x8x8xf32>
    %127 = arith.addf %122, %126 : vector<2x8x8xf32>
    %cst_44 = arith.constant -3.40282347E+38 : f32
    %128 = vector.broadcast %cst_44 : f32 to vector<2x8x8xf32>
    %129 = arith.select %8, %127, %128 : vector<2x8x8xi1>, vector<2x8x8xf32>
    %cst_45 = arith.constant dense<0xFF800000> : vector<2x8xf32>
    %130 = vector.multi_reduction <maximumf>, %129, %cst_45 [2] : vector<2x8x8xf32> to vector<2x8xf32>
    %131 = vector.shape_cast %130 : vector<2x8xf32> to vector<2x8x1xf32>
    %132 = vector.broadcast %131 : vector<2x8x1xf32> to vector<2x8x8xf32>
    %133 = arith.subf %129, %132 : vector<2x8x8xf32>
    %134 = math.exp %133 : vector<2x8x8xf32>
    %cst_46 = arith.constant dense<0.000000e+00> : vector<2x8xf32>
    %135 = vector.multi_reduction <add>, %134, %cst_46 [2] : vector<2x8x8xf32> to vector<2x8xf32>
    %136 = vector.shape_cast %135 : vector<2x8xf32> to vector<2x8x1xf32>
    %137 = vector.broadcast %136 : vector<2x8x1xf32> to vector<2x8x8xf32>
    %138 = arith.divf %134, %137 : vector<2x8x8xf32>
    %139 = arith.truncf %138 : vector<2x8x8xf32> to vector<2x8x8xbf16>
    %cst_47 = arith.constant dense<0.000000e+00> : vector<2x8x64xf32>
    %140 = tpu.matmul %139, %119, %cst_47 {dimension_numbers = #tpu.dot_dimension_numbers<[2], [1], [1], [2], [0, 0, 0, 1, 1, 2], [0], [0]>} : vector<2x8x8xbf16>, vector<2x8x64xbf16>, vector<2x8x64xf32> -> vector<2x8x64xf32>
    %141 = tpu.concatenate %68, %92, %116, %140 in 2 : vector<2x8x64xf32>, vector<2x8x64xf32>, vector<2x8x64xf32>, vector<2x8x64xf32> -> vector<2x8x256xf32>
    %142 = vector.shape_cast %141 : vector<2x8x256xf32> to vector<16x256xf32>
    %143 = arith.truncf %142 : vector<16x256xf32> to vector<16x256xbf16>
    %c0_48 = arith.constant 0 : index
    %c0_49 = arith.constant 0 : index
    %c0_50 = arith.constant 0 : index
    %144 = vector.load %arg27[%c0_48, %c0_49, %c0_50] : memref<1x256x32xbf16, #tpu.memory_space<vmem>>, vector<1x256x32xbf16>
    %145 = vector.shape_cast %144 : vector<1x256x32xbf16> to vector<256x32xbf16>
    %cst_51 = arith.constant dense<0.000000e+00> : vector<16x32xf32>
    %146 = tpu.matmul %143, %145, %cst_51 {dimension_numbers = #tpu.dot_dimension_numbers<[1], [0], [0], [1], [0, 0, 1, 1], [], []>} : vector<16x256xbf16>, vector<256x32xbf16>, vector<16x32xf32> -> vector<16x32xf32>
    %c0_52 = arith.constant 0 : index
    %c0_53 = arith.constant 0 : index
    %c0_54 = arith.constant 0 : index
    %147 = vector.load %arg28[%c0_52, %c0_53, %c0_54] : memref<1x1x32xf32, #tpu.memory_space<vmem>>, vector<1x1x32xf32>
    %148 = vector.shape_cast %147 : vector<1x1x32xf32> to vector<1x32xf32>
    %149 = vector.broadcast %148 : vector<1x32xf32> to vector<16x32xf32>
    %150 = arith.addf %146, %149 : vector<16x32xf32>
    %151 = vector.shape_cast %150 : vector<16x32xf32> to vector<2x8x32xf32>
    %152 = arith.addf %3, %151 : vector<2x8x32xf32>
    %c0_55 = arith.constant 0 : index
    %c0_56 = arith.constant 0 : index
    %153 = vector.load %arg40[%c0_55, %c0_56] : memref<2x32xf32, #tpu.memory_space<vmem>>, vector<2x32xf32>
    %154 = arith.truncf %153 : vector<2x32xf32> to vector<2x32xbf16>
    %c0_57 = arith.constant 0 : index
    %c0_58 = arith.constant 0 : index
    %c0_59 = arith.constant 0 : index
    %155 = vector.load %arg29[%c0_57, %c0_58, %c0_59] : memref<1x32x256xbf16, #tpu.memory_space<vmem>>, vector<1x32x256xbf16>
    %156 = vector.shape_cast %155 : vector<1x32x256xbf16> to vector<32x256xbf16>
    %cst_60 = arith.constant dense<0.000000e+00> : vector<2x256xf32>
    %157 = tpu.matmul %154, %156, %cst_60 {dimension_numbers = #tpu.dot_dimension_numbers<[1], [0], [0], [1], [0, 0, 1, 1], [], []>} : vector<2x32xbf16>, vector<32x256xbf16>, vector<2x256xf32> -> vector<2x256xf32>
    %158 = arith.truncf %157 : vector<2x256xf32> to vector<2x256xbf16>
    %c0_61 = arith.constant 0 : index
    %c0_62 = arith.constant 0 : index
    %c0_63 = arith.constant 0 : index
    %159 = vector.load %arg30[%c0_61, %c0_62, %c0_63] : memref<1x256x32xbf16, #tpu.memory_space<vmem>>, vector<1x256x32xbf16>
    %160 = vector.shape_cast %159 : vector<1x256x32xbf16> to vector<256x32xbf16>
    %cst_64 = arith.constant dense<0.000000e+00> : vector<2x32xf32>
    %161 = tpu.matmul %158, %160, %cst_64 {dimension_numbers = #tpu.dot_dimension_numbers<[1], [0], [0], [1], [0, 0, 1, 1], [], []>} : vector<2x256xbf16>, vector<256x32xbf16>, vector<2x32xf32> -> vector<2x32xf32>
    %c0_65 = arith.constant 0 : index
    %c0_66 = arith.constant 0 : index
    %c0_67 = arith.constant 0 : index
    %162 = vector.load %arg31[%c0_65, %c0_66, %c0_67] : memref<1x1x32xf32, #tpu.memory_space<vmem>>, vector<1x1x32xf32>
    %163 = vector.shape_cast %162 : vector<1x1x32xf32> to vector<1x32xf32>
    %164 = vector.broadcast %163 : vector<1x32xf32> to vector<2x32xf32>
    %165 = arith.addf %161, %164 : vector<2x32xf32>
    %166 = vector.shape_cast %165 : vector<2x32xf32> to vector<2x1x32xf32>
    %167 = vector.broadcast %166 : vector<2x1x32xf32> to vector<2x8x32xf32>
    %168 = arith.addf %152, %167 : vector<2x8x32xf32>
    %169 = vector.shape_cast %168 : vector<2x8x32xf32> to vector<16x32xf32>
    %c0_68 = arith.constant 0 : index
    %c0_69 = arith.constant 0 : index
    %c0_70 = arith.constant 0 : index
    %170 = vector.load %arg32[%c0_68, %c0_69, %c0_70] : memref<1x1x32xf32, #tpu.memory_space<vmem>>, vector<1x1x32xf32>
    %171 = vector.shape_cast %170 : vector<1x1x32xf32> to vector<1x32xf32>
    %c0_71 = arith.constant 0 : index
    %c0_72 = arith.constant 0 : index
    %c0_73 = arith.constant 0 : index
    %172 = vector.load %arg33[%c0_71, %c0_72, %c0_73] : memref<1x1x32xf32, #tpu.memory_space<vmem>>, vector<1x1x32xf32>
    %173 = vector.shape_cast %172 : vector<1x1x32xf32> to vector<1x32xf32>
    %cst_74 = arith.constant dense<0.000000e+00> : vector<16xf32>
    %174 = vector.multi_reduction <add>, %169, %cst_74 [1] : vector<16x32xf32> to vector<16xf32>
    %175 = vector.shape_cast %174 : vector<16xf32> to vector<16x1xf32>
    %cst_75 = arith.constant 3.200000e+01 : f32
    %176 = vector.broadcast %cst_75 : f32 to vector<16x1xf32>
    %177 = arith.divf %175, %176 : vector<16x1xf32>
    %178 = vector.broadcast %177 : vector<16x1xf32> to vector<16x32xf32>
    %179 = arith.subf %169, %178 : vector<16x32xf32>
    %180 = vector.broadcast %177 : vector<16x1xf32> to vector<16x32xf32>
    %181 = arith.subf %169, %180 : vector<16x32xf32>
    %182 = arith.mulf %179, %181 : vector<16x32xf32>
    %cst_76 = arith.constant dense<0.000000e+00> : vector<16xf32>
    %183 = vector.multi_reduction <add>, %182, %cst_76 [1] : vector<16x32xf32> to vector<16xf32>
    %184 = vector.shape_cast %183 : vector<16xf32> to vector<16x1xf32>
    %cst_77 = arith.constant 3.200000e+01 : f32
    %185 = vector.broadcast %cst_77 : f32 to vector<16x1xf32>
    %186 = arith.divf %184, %185 : vector<16x1xf32>
    %187 = vector.broadcast %177 : vector<16x1xf32> to vector<16x32xf32>
    %188 = arith.subf %169, %187 : vector<16x32xf32>
    %cst_78 = arith.constant 9.99999974E-6 : f32
    %189 = vector.broadcast %cst_78 : f32 to vector<16x1xf32>
    %190 = arith.addf %186, %189 : vector<16x1xf32>
    %191 = math.rsqrt %190 : vector<16x1xf32>
    %192 = vector.broadcast %191 : vector<16x1xf32> to vector<16x32xf32>
    %193 = arith.mulf %188, %192 : vector<16x32xf32>
    %194 = vector.broadcast %171 : vector<1x32xf32> to vector<16x32xf32>
    %195 = arith.mulf %193, %194 : vector<16x32xf32>
    %196 = vector.broadcast %173 : vector<1x32xf32> to vector<16x32xf32>
    %197 = arith.addf %195, %196 : vector<16x32xf32>
    %198 = arith.truncf %197 : vector<16x32xf32> to vector<16x32xbf16>
    %c0_79 = arith.constant 0 : index
    %c0_80 = arith.constant 0 : index
    %c0_81 = arith.constant 0 : index
    %199 = vector.load %arg34[%c0_79, %c0_80, %c0_81] : memref<1x32x256xbf16, #tpu.memory_space<vmem>>, vector<1x32x256xbf16>
    %200 = vector.shape_cast %199 : vector<1x32x256xbf16> to vector<32x256xbf16>
    %cst_82 = arith.constant dense<0.000000e+00> : vector<16x256xf32>
    %201 = tpu.matmul %198, %200, %cst_82 {dimension_numbers = #tpu.dot_dimension_numbers<[1], [0], [0], [1], [0, 0, 1, 1], [], []>} : vector<16x32xbf16>, vector<32x256xbf16>, vector<16x256xf32> -> vector<16x256xf32>
    %c0_83 = arith.constant 0 : index
    %c0_84 = arith.constant 0 : index
    %c0_85 = arith.constant 0 : index
    %202 = vector.load %arg35[%c0_83, %c0_84, %c0_85] : memref<1x1x256xf32, #tpu.memory_space<vmem>>, vector<1x1x256xf32>
    %203 = vector.shape_cast %202 : vector<1x1x256xf32> to vector<1x256xf32>
    %204 = vector.broadcast %203 : vector<1x256xf32> to vector<16x256xf32>
    %205 = arith.addf %201, %204 : vector<16x256xf32>
    %206 = vector.extract_strided_slice %205 {offsets = [0, 0], sizes = [16, 128], strides = [1, 1]} : vector<16x256xf32> to vector<16x128xf32>
    %207 = vector.extract_strided_slice %205 {offsets = [0, 128], sizes = [16, 128], strides = [1, 1]} : vector<16x256xf32> to vector<16x128xf32>
    %cst_86 = arith.constant 5.000000e-01 : f32
    %208 = vector.broadcast %cst_86 : f32 to vector<16x128xf32>
    %209 = arith.mulf %208, %207 : vector<16x128xf32>
    %cst_87 = arith.constant 4.471500e-02 : f32
    %210 = vector.broadcast %cst_87 : f32 to vector<16x128xf32>
    %211 = arith.mulf %210, %207 : vector<16x128xf32>
    %212 = arith.mulf %211, %207 : vector<16x128xf32>
    %213 = arith.mulf %212, %207 : vector<16x128xf32>
    %214 = arith.addf %207, %213 : vector<16x128xf32>
    %cst_88 = arith.constant 0.797884583 : f32
    %215 = vector.broadcast %cst_88 : f32 to vector<16x128xf32>
    %216 = arith.mulf %215, %214 : vector<16x128xf32>
    %217 = math.tanh %216 : vector<16x128xf32>
    %cst_89 = arith.constant 1.000000e+00 : f32
    %218 = vector.broadcast %cst_89 : f32 to vector<16x128xf32>
    %219 = arith.addf %218, %217 : vector<16x128xf32>
    %220 = arith.mulf %209, %219 : vector<16x128xf32>
    %221 = arith.mulf %206, %220 : vector<16x128xf32>
    %222 = arith.truncf %221 : vector<16x128xf32> to vector<16x128xbf16>
    %c0_90 = arith.constant 0 : index
    %c0_91 = arith.constant 0 : index
    %c0_92 = arith.constant 0 : index
    %223 = vector.load %arg36[%c0_90, %c0_91, %c0_92] : memref<1x128x32xbf16, #tpu.memory_space<vmem>>, vector<1x128x32xbf16>
    %224 = vector.shape_cast %223 : vector<1x128x32xbf16> to vector<128x32xbf16>
    %cst_93 = arith.constant dense<0.000000e+00> : vector<16x32xf32>
    %225 = tpu.matmul %222, %224, %cst_93 {dimension_numbers = #tpu.dot_dimension_numbers<[1], [0], [0], [1], [0, 0, 1, 1], [], []>} : vector<16x128xbf16>, vector<128x32xbf16>, vector<16x32xf32> -> vector<16x32xf32>
    %c0_94 = arith.constant 0 : index
    %c0_95 = arith.constant 0 : index
    %c0_96 = arith.constant 0 : index
    %226 = vector.load %arg37[%c0_94, %c0_95, %c0_96] : memref<1x1x32xf32, #tpu.memory_space<vmem>>, vector<1x1x32xf32>
    %227 = vector.shape_cast %226 : vector<1x1x32xf32> to vector<1x32xf32>
    %228 = vector.broadcast %227 : vector<1x32xf32> to vector<16x32xf32>
    %229 = arith.addf %225, %228 : vector<16x32xf32>
    %230 = vector.shape_cast %229 : vector<16x32xf32> to vector<2x8x32xf32>
    %231 = arith.addf %168, %230 : vector<2x8x32xf32>
    %c0_97 = arith.constant 0 : index
    %c0_98 = arith.constant 0 : index
    %c0_99 = arith.constant 0 : index
    %232 = vector.load %arg39[%c0_97, %c0_98, %c0_99] : memref<2x8x32xf32, #tpu.memory_space<vmem>>, vector<2x8x32xf32>
    tpu.vector_store %arg39[%c0_97, %c0_98, %c0_99], %231 {strides = array<i32>} : memref<2x8x32xf32, #tpu.memory_space<vmem>>, vector<2x8x32xf32>,
    %c1_i32 = arith.constant 1 : i32
    %233 = arith.cmpi eq, %arg0, %c1_i32 : i32
    %234 = arith.extui %233 : i1 to i32
    %c0_i32_100 = arith.constant 0 : i32
    %235 = arith.cmpi ne, %234, %c0_i32_100 : i32
    scf.if %235 {
      %236 = vector.shape_cast %231 : vector<2x8x32xf32> to vector<16x32xf32>
      %c0_101 = arith.constant 0 : index
      %c0_102 = arith.constant 0 : index
      %237 = vector.load %arg20[%c0_101, %c0_102] : memref<1x32xf32, #tpu.memory_space<vmem>>, vector<1x32xf32>
      %c0_103 = arith.constant 0 : index
      %c0_104 = arith.constant 0 : index
      %238 = vector.load %arg21[%c0_103, %c0_104] : memref<1x32xf32, #tpu.memory_space<vmem>>, vector<1x32xf32>
      %cst_105 = arith.constant dense<0.000000e+00> : vector<16xf32>
      %239 = vector.multi_reduction <add>, %236, %cst_105 [1] : vector<16x32xf32> to vector<16xf32>
      %240 = vector.shape_cast %239 : vector<16xf32> to vector<16x1xf32>
      %cst_106 = arith.constant 3.200000e+01 : f32
      %241 = vector.broadcast %cst_106 : f32 to vector<16x1xf32>
      %242 = arith.divf %240, %241 : vector<16x1xf32>
      %243 = vector.broadcast %242 : vector<16x1xf32> to vector<16x32xf32>
      %244 = arith.subf %236, %243 : vector<16x32xf32>
      %245 = vector.broadcast %242 : vector<16x1xf32> to vector<16x32xf32>
      %246 = arith.subf %236, %245 : vector<16x32xf32>
      %247 = arith.mulf %244, %246 : vector<16x32xf32>
      %cst_107 = arith.constant dense<0.000000e+00> : vector<16xf32>
      %248 = vector.multi_reduction <add>, %247, %cst_107 [1] : vector<16x32xf32> to vector<16xf32>
      %249 = vector.shape_cast %248 : vector<16xf32> to vector<16x1xf32>
      %cst_108 = arith.constant 3.200000e+01 : f32
      %250 = vector.broadcast %cst_108 : f32 to vector<16x1xf32>
      %251 = arith.divf %249, %250 : vector<16x1xf32>
      %252 = vector.broadcast %242 : vector<16x1xf32> to vector<16x32xf32>
      %253 = arith.subf %236, %252 : vector<16x32xf32>
      %cst_109 = arith.constant 9.99999974E-6 : f32
      %254 = vector.broadcast %cst_109 : f32 to vector<16x1xf32>
      %255 = arith.addf %251, %254 : vector<16x1xf32>
      %256 = math.rsqrt %255 : vector<16x1xf32>
      %257 = vector.broadcast %256 : vector<16x1xf32> to vector<16x32xf32>
      %258 = arith.mulf %253, %257 : vector<16x32xf32>
      %259 = vector.broadcast %237 : vector<1x32xf32> to vector<16x32xf32>
      %260 = arith.mulf %258, %259 : vector<16x32xf32>
      %261 = vector.broadcast %238 : vector<1x32xf32> to vector<16x32xf32>
      %262 = arith.addf %260, %261 : vector<16x32xf32>
      %263 = arith.truncf %262 : vector<16x32xf32> to vector<16x32xbf16>
      %c0_110 = arith.constant 0 : index
      %c0_111 = arith.constant 0 : index
      %264 = vector.load %arg22[%c0_110, %c0_111] : memref<32x16xbf16, #tpu.memory_space<vmem>>, vector<32x16xbf16>
      %cst_112 = arith.constant dense<0.000000e+00> : vector<16x16xf32>
      %265 = tpu.matmul %263, %264, %cst_112 {dimension_numbers = #tpu.dot_dimension_numbers<[1], [0], [0], [1], [0, 0, 1, 1], [], []>} : vector<16x32xbf16>, vector<32x16xbf16>, vector<16x16xf32> -> vector<16x16xf32>
      %c0_113 = arith.constant 0 : index
      %c0_114 = arith.constant 0 : index
      %266 = vector.load %arg23[%c0_113, %c0_114] : memref<1x16xf32, #tpu.memory_space<vmem>>, vector<1x16xf32>
      %267 = vector.broadcast %266 : vector<1x16xf32> to vector<16x16xf32>
      %268 = arith.addf %265, %267 : vector<16x16xf32>
      %269 = vector.shape_cast %268 : vector<16x16xf32> to vector<2x8x16xf32>
      %c0_115 = arith.constant 0 : index
      %c0_116 = arith.constant 0 : index
      %c0_117 = arith.constant 0 : index
      %270 = vector.load %arg38[%c0_115, %c0_116, %c0_117] : memref<2x8x16xf32, #tpu.memory_space<vmem>>, vector<2x8x16xf32>
      tpu.vector_store %arg38[%c0_115, %c0_116, %c0_117], %269 {strides = array<i32>} : memref<2x8x16xf32, #tpu.memory_space<vmem>>, vector<2x8x16xf32>,
    } else {
    }
    return
  }
  func.func @transform_0(%arg0: i32) -> (i32, i32) {
    %c0_i32 = arith.constant 0 : i32
    %c0_i32_0 = arith.constant 0 : i32
    %c0_i32_1 = arith.constant 0 : i32
    return %c0_i32, %c0_i32_0 : i32, i32
  }
  func.func @transform_1(%arg0: i32) -> (i32, i32) {
    %c0_i32 = arith.constant 0 : i32
    %c0_i32_0 = arith.constant 0 : i32
    %c0_i32_1 = arith.constant 0 : i32
    return %c0_i32, %c0_i32_0 : i32, i32
  }
  func.func @transform_2(%arg0: i32) -> (i32, i32, i32) {
    %c0_i32 = arith.constant 0 : i32
    %c0_i32_0 = arith.constant 0 : i32
    %c0_i32_1 = arith.constant 0 : i32
    %c0_i32_2 = arith.constant 0 : i32
    return %c0_i32, %c0_i32_0, %c0_i32_1 : i32, i32, i32
  }
  func.func @transform_3(%arg0: i32) -> (i32, i32) {
    %c0_i32 = arith.constant 0 : i32
    %c0_i32_0 = arith.constant 0 : i32
    %c0_i32_1 = arith.constant 0 : i32
    return %c0_i32, %c0_i32_0 : i32, i32
  }
  func.func @transform_4(%arg0: i32) -> (i32, i32) {
    %c0_i32 = arith.constant 0 : i32
    %c0_i32_0 = arith.constant 0 : i32
    %c0_i32_1 = arith.constant 0 : i32
    return %c0_i32, %c0_i32_0 : i32, i32
  }
  func.func @transform_5(%arg0: i32) -> (i32, i32, i32) {
    %c0_i32 = arith.constant 0 : i32
    %c0_i32_0 = arith.constant 0 : i32
    %c0_i32_1 = arith.constant 0 : i32
    %c0_i32_2 = arith.constant 0 : i32
    return %c0_i32, %c0_i32_0, %c0_i32_1 : i32, i32, i32
  }
  func.func @transform_6(%arg0: i32) -> (i32, i32, i32) {
    %c0_i32 = arith.constant 0 : i32
    %c0_i32_0 = arith.constant 0 : i32
    %c0_i32_1 = arith.constant 0 : i32
    %c0_i32_2 = arith.constant 0 : i32
    return %c0_i32, %c0_i32_0, %c0_i32_1 : i32, i32, i32
  }
  func.func @transform_7(%arg0: i32) -> (i32, i32) {
    %c0_i32 = arith.constant 0 : i32
    %c0_i32_0 = arith.constant 0 : i32
    %c0_i32_1 = arith.constant 0 : i32
    return %c0_i32, %c0_i32_0 : i32, i32
  }
  func.func @transform_8(%arg0: i32) -> (i32, i32) {
    %c0_i32 = arith.constant 0 : i32
    %c0_i32_0 = arith.constant 0 : i32
    %c0_i32_1 = arith.constant 0 : i32
    return %c0_i32, %c0_i32_0 : i32, i32
  }
  func.func @transform_9(%arg0: i32) -> (i32, i32) {
    %c0_i32 = arith.constant 0 : i32
    %c0_i32_0 = arith.constant 0 : i32
    %c0_i32_1 = arith.constant 0 : i32
    return %c0_i32, %c0_i32_0 : i32, i32
  }
  func.func @transform_10(%arg0: i32) -> (i32, i32) {
    %c0_i32 = arith.constant 0 : i32
    %c0_i32_0 = arith.constant 0 : i32
    %c0_i32_1 = arith.constant 0 : i32
    return %c0_i32, %c0_i32_0 : i32, i32
  }
  func.func @transform_11(%arg0: i32) -> (i32, i32) {
    %c0_i32 = arith.constant 0 : i32
    %c0_i32_0 = arith.constant 0 : i32
    %c0_i32_1 = arith.constant 0 : i32
    return %c0_i32, %c0_i32_0 : i32, i32
  }
  func.func @transform_12(%arg0: i32) -> (i32, i32) {
    %c0_i32 = arith.constant 0 : i32
    %c0_i32_0 = arith.constant 0 : i32
    %c0_i32_1 = arith.constant 0 : i32
    return %c0_i32, %c0_i32_0 : i32, i32
  }
  func.func @transform_13(%arg0: i32) -> (i32, i32) {
    %c0_i32 = arith.constant 0 : i32
    %c0_i32_0 = arith.constant 0 : i32
    %c0_i32_1 = arith.constant 0 : i32
    return %c0_i32, %c0_i32_0 : i32, i32
  }
  func.func @transform_14(%arg0: i32) -> (i32, i32) {
    %c0_i32 = arith.constant 0 : i32
    %c0_i32_0 = arith.constant 0 : i32
    %c0_i32_1 = arith.constant 0 : i32
    return %c0_i32, %c0_i32_0 : i32, i32
  }
  func.func @transform_15(%arg0: i32) -> (i32, i32) {
    %c0_i32 = arith.constant 0 : i32
    %c0_i32_0 = arith.constant 0 : i32
    %c0_i32_1 = arith.constant 0 : i32
    return %c0_i32, %c0_i32_0 : i32, i32
  }
  func.func @transform_16(%arg0: i32) -> (i32, i32) {
    %c0_i32 = arith.constant 0 : i32
    %c0_i32_0 = arith.constant 0 : i32
    %c0_i32_1 = arith.constant 0 : i32
    return %c0_i32, %c0_i32_0 : i32, i32
  }
  func.func @transform_17(%arg0: i32) -> (i32, i32) {
    %c0_i32 = arith.constant 0 : i32
    %c0_i32_0 = arith.constant 0 : i32
    %c0_i32_1 = arith.constant 0 : i32
    return %c0_i32, %c0_i32_0 : i32, i32
  }
  func.func @transform_18(%arg0: i32) -> (i32, i32) {
    %c0_i32 = arith.constant 0 : i32
    %c0_i32_0 = arith.constant 0 : i32
    %c0_i32_1 = arith.constant 0 : i32
    return %c0_i32, %c0_i32_0 : i32, i32
  }
  func.func @transform_19(%arg0: i32) -> (i32, i32) {
    %c0_i32 = arith.constant 0 : i32
    %c0_i32_0 = arith.constant 0 : i32
    %c0_i32_1 = arith.constant 0 : i32
    return %c0_i32, %c0_i32_0 : i32, i32
  }
  func.func @transform_20(%arg0: i32) -> (i32, i32) {
    %c0_i32 = arith.constant 0 : i32
    %c0_i32_0 = arith.constant 0 : i32
    %c0_i32_1 = arith.constant 0 : i32
    return %c0_i32, %c0_i32_0 : i32, i32
  }
  func.func @transform_21(%arg0: i32) -> (i32, i32) {
    %c0_i32 = arith.constant 0 : i32
    %c0_i32_0 = arith.constant 0 : i32
    %c0_i32_1 = arith.constant 0 : i32
    return %c0_i32, %c0_i32_0 : i32, i32
  }
  func.func @transform_22(%arg0: i32) -> (i32, i32) {
    %c0_i32 = arith.constant 0 : i32
    %c0_i32_0 = arith.constant 0 : i32
    %c0_i32_1 = arith.constant 0 : i32
    return %c0_i32, %c0_i32_0 : i32, i32
  }
  func.func @transform_23(%arg0: i32) -> (i32, i32, i32) {
    %c0_i32 = arith.constant 0 : i32
    %c0_i32_0 = arith.constant 0 : i32
    %c0_i32_1 = arith.constant 0 : i32
    return %arg0, %c0_i32, %c0_i32_0 : i32, i32, i32
  }
  func.func @transform_24(%arg0: i32) -> (i32, i32, i32) {
    %c0_i32 = arith.constant 0 : i32
    %c0_i32_0 = arith.constant 0 : i32
    %c0_i32_1 = arith.constant 0 : i32
    return %arg0, %c0_i32, %c0_i32_0 : i32, i32, i32
  }
  func.func @transform_25(%arg0: i32) -> (i32, i32, i32) {
    %c0_i32 = arith.constant 0 : i32
    %c0_i32_0 = arith.constant 0 : i32
    %c0_i32_1 = arith.constant 0 : i32
    return %arg0, %c0_i32, %c0_i32_0 : i32, i32, i32
  }
  func.func @transform_26(%arg0: i32) -> (i32, i32, i32) {
    %c0_i32 = arith.constant 0 : i32
    %c0_i32_0 = arith.constant 0 : i32
    %c0_i32_1 = arith.constant 0 : i32
    return %arg0, %c0_i32, %c0_i32_0 : i32, i32, i32
  }
  func.func @transform_27(%arg0: i32) -> (i32, i32, i32) {
    %c0_i32 = arith.constant 0 : i32
    %c0_i32_0 = arith.constant 0 : i32
    %c0_i32_1 = arith.constant 0 : i32
    return %arg0, %c0_i32, %c0_i32_0 : i32, i32, i32
  }
  func.func @transform_28(%arg0: i32) -> (i32, i32, i32) {
    %c0_i32 = arith.constant 0 : i32
    %c0_i32_0 = arith.constant 0 : i32
    %c0_i32_1 = arith.constant 0 : i32
    return %arg0, %c0_i32, %c0_i32_0 : i32, i32, i32
  }
  func.func @transform_29(%arg0: i32) -> (i32, i32, i32) {
    %c0_i32 = arith.constant 0 : i32
    %c0_i32_0 = arith.constant 0 : i32
    %c0_i32_1 = arith.constant 0 : i32
    return %arg0, %c0_i32, %c0_i32_0 : i32, i32, i32
  }
  func.func @transform_30(%arg0: i32) -> (i32, i32, i32) {
    %c0_i32 = arith.constant 0 : i32
    %c0_i32_0 = arith.constant 0 : i32
    %c0_i32_1 = arith.constant 0 : i32
    return %arg0, %c0_i32, %c0_i32_0 : i32, i32, i32
  }
  func.func @transform_31(%arg0: i32) -> (i32, i32, i32) {
    %c0_i32 = arith.constant 0 : i32
    %c0_i32_0 = arith.constant 0 : i32
    %c0_i32_1 = arith.constant 0 : i32
    return %arg0, %c0_i32, %c0_i32_0 : i32, i32, i32
  }
  func.func @transform_32(%arg0: i32) -> (i32, i32, i32) {
    %c0_i32 = arith.constant 0 : i32
    %c0_i32_0 = arith.constant 0 : i32
    %c0_i32_1 = arith.constant 0 : i32
    return %arg0, %c0_i32, %c0_i32_0 : i32, i32, i32
  }
  func.func @transform_33(%arg0: i32) -> (i32, i32, i32) {
    %c0_i32 = arith.constant 0 : i32
    %c0_i32_0 = arith.constant 0 : i32
    %c0_i32_1 = arith.constant 0 : i32
    return %arg0, %c0_i32, %c0_i32_0 : i32, i32, i32
  }
  func.func @transform_34(%arg0: i32) -> (i32, i32, i32) {
    %c0_i32 = arith.constant 0 : i32
    %c0_i32_0 = arith.constant 0 : i32
    %c0_i32_1 = arith.constant 0 : i32
    return %arg0, %c0_i32, %c0_i32_0 : i32, i32, i32
  }
  func.func @transform_35(%arg0: i32) -> (i32, i32, i32) {
    %c0_i32 = arith.constant 0 : i32
    %c0_i32_0 = arith.constant 0 : i32
    %c0_i32_1 = arith.constant 0 : i32
    return %arg0, %c0_i32, %c0_i32_0 : i32, i32, i32
  }
  func.func @transform_36(%arg0: i32) -> (i32, i32, i32) {
    %c0_i32 = arith.constant 0 : i32
    %c0_i32_0 = arith.constant 0 : i32
    %c0_i32_1 = arith.constant 0 : i32
    return %arg0, %c0_i32, %c0_i32_0 : i32, i32, i32
  }
  func.func @transform_37(%arg0: i32) -> (i32, i32, i32) {
    %c0_i32 = arith.constant 0 : i32
    %c0_i32_0 = arith.constant 0 : i32
    %c0_i32_1 = arith.constant 0 : i32
    %c0_i32_2 = arith.constant 0 : i32
    return %c0_i32, %c0_i32_0, %c0_i32_1 : i32, i32, i32
  }
}

</mosaic_0001>

<bundles_post_ra>
// kernel: diffusion_transformer_forward.1
= control target key start
LH: loop header
LB: loop body
LE: loop exit
PB: predicated region body
PF: predicated region fallthrough
CT: control target
= control target key end

     0   :  { %s4897_s6 = smov 1   ;;  %s4898_s10 = smov 2   ;;  %s5655_s0 = inlined_call_operand.smem [shape: u32[38], index: -1, kind: input, shape index: {}] }
   0x1   :  { %s4955_s5 = sld [smem:[%s5655_s0]]   ;;  %s4899_s14 = smov 3  }
   0x2   :  { %s4960_s9 = sld [smem:[%s5655_s0 + %s4897_s6]]   ;;  %s4900_s18 = smov 4  }
   0x3   :  { %s4965_s13 = sld [smem:[%s5655_s0 + %s4898_s10]]   ;;  %s4901_s22 = smov 5  }
   0x4   :  { %s4970_s17 = sld [smem:[%s5655_s0 + %s4899_s14]]   ;;  %s4902_s26 = smov 6  }
   0x5   :  { %s4975_s21 = sld [smem:[%s5655_s0 + %s4900_s18]]   ;;  %s4903_s30 = smov 7  }
   0x6   :  { %s4980_s25 = sld [smem:[%s5655_s0 + %s4901_s22]]   ;;  %s4904_s4 = smov 8  }
   0x7   :  { %5664 = sst [smem:[#allocation7_spill]] %s4955_s5  ;;  %s4905_s10 = smov 9  }
   0x8   :  { %5665 = sst [smem:[#allocation8_spill]] %s4960_s9  ;;  %s4906_s15 = smov 10  }
   0x9   :  { %5666 = sst [smem:[#allocation9_spill]] %s4965_s13  ;;  %s4907_s20 = smov 11  }
   0xa   :  { %5667 = sst [smem:[#allocation10_spill]] %s4970_s17  ;;  %s4909_s1 = smov 13  }
   0xb   :  { %5668 = sst [smem:[#allocation11_spill]] %s4975_s21  ;;  %s4910_s7 = smov 14  }
   0xc   :  { %5669 = sst [smem:[#allocation12_spill]] %s4980_s25  ;;  %s4912_s22 = smov 16  }
   0xd   :  { %s4985_s29 = sld [smem:[%s5655_s0 + %s4902_s26]]   ;;  %s4908_s26 = smov 12  }
   0xe   :  { %s4990_s3 = sld [smem:[%s5655_s0 + %s4903_s30]]   ;;  %s4913_s28 = smov 17  }
   0xf   :  { %s4995_s8 = sld [smem:[%s5655_s0 + %s4904_s4]]  }
  0x10   :  { %s5000_s14 = sld [smem:[%s5655_s0 + %s4905_s10]]  }
  0x11   :  { %s5005_s19 = sld [smem:[%s5655_s0 + %s4906_s15]]   ;;  %s4911_s15 = smov 15  }
  0x12   :  { %s5010_s24 = sld [smem:[%s5655_s0 + %s4907_s20]]  }
  0x13   :  { %5670 = sst [smem:[#allocation13_spill]] %s4985_s29 }
  0x14   :  { %5671 = sst [smem:[#allocation14_spill]] %s4990_s3 }
  0x15   :  { %s5015_s30 = sld [smem:[%s5655_s0 + %s4908_s26]]  }
  0x16   :  { %5672 = sst [smem:[#allocation15_spill]] %s5000_s14 }
  0x17   :  { %5673 = sst [smem:[#allocation16_spill]] %s5005_s19 }
  0x18   :  { %5674 = sst [smem:[#allocation17_spill]] %s5010_s24 }
  0x19   :  { %s5020_s6 = sld [smem:[%s5655_s0 + %s4909_s1]]  }
  0x1a   :  { %s5025_s12 = sld [smem:[%s5655_s0 + %s4910_s7]]   ;;  %s4914_s7 = smov 18  }
  0x1b   :  { %5675 = sst [smem:[#allocation18_spill]] %s5015_s30 }
  0x1c   :  { %s5030_s20 = sld [smem:[%s5655_s0 + %s4911_s15]]   ;;  %s4915_s15 = smov 19  }
  0x1d   :  { %s5035_s27 = sld [smem:[%s5655_s0 + %s4912_s22]]   ;;  %s4916_s22 = smov 20  }
  0x1e   :  { %s5040_s4 = sld [smem:[%s5655_s0 + %s4913_s28]]   ;;  %s4917_s28 = smov 21  }
  0x1f   :  { %5676 = sst [smem:[#allocation19_spill]] %s5020_s6 }
  0x20   :  { %5677 = sst [smem:[#allocation20_spill]] %s5025_s12 }
  0x21   :  { %s5045_s29 = sld [smem:[%s5655_s0 + %s4914_s7]]   ;;  %s4918_s7 = smov 22  }
  0x22   :  { %5678 = sst [smem:[#allocation21_spill]] %s5030_s20 }
  0x23   :  { %5679 = sst [smem:[#allocation22_spill]] %s5035_s27 }
  0x24   :  { %5680 = sst [smem:[#allocation23_spill]] %s5040_s4 }
  0x25   :  { %s5050_s25 = sld [smem:[%s5655_s0 + %s4915_s15]]   ;;  %s4919_s15 = smov 23  }
  0x26   :  { %s5055_s21 = sld [smem:[%s5655_s0 + %s4916_s22]]   ;;  %s4920_s22 = smov 24  }
  0x27   :  { %5681 = sst [smem:[#allocation24_spill]] %s5045_s29 }
  0x28   :  { %s5060_s27 = sld [smem:[%s5655_s0 + %s4917_s28]]   ;;  %s4921_s28 = smov 25  }
  0x29   :  { %s5065_s6 = sld [smem:[%s5655_s0 + %s4918_s7]]   ;;  %s4922_s7 = smov 26  }
  0x2b   :  { %5682 = sst [smem:[#allocation25_spill]] %s5050_s25 }
  0x2c   :  { %5683 = sst [smem:[#allocation26_spill]] %s5055_s21 }
  0x2d   :  { %s5070_s25 = sld [smem:[%s5655_s0 + %s4919_s15]]   ;;  %s4923_s15 = smov 27  }
  0x2e   :  { %5684 = sst [smem:[#allocation27_spill]] %s5060_s27 }
  0x2f   :  { %5685 = sst [smem:[#allocation28_spill]] %s5065_s6 }
  0x30   :  { %s5075_s21 = sld [smem:[%s5655_s0 + %s4920_s22]]   ;;  %s4924_s22 = smov 28  }
  0x31   :  { %s5080_s27 = sld [smem:[%s5655_s0 + %s4921_s28]]   ;;  %s4925_s28 = smov 29  }
  0x32   :  { %s5085_s6 = sld [smem:[%s5655_s0 + %s4922_s7]]   ;;  %s4926_s7 = smov 30  }
  0x33   :  { %5686 = sst [smem:[#allocation29_spill]] %s5070_s25 }
  0x34   :  { %s5090_s29 = sld [smem:[%s5655_s0 + %s4923_s15]]   ;;  %s4927_s15 = smov 31  }
  0x35   :  { %s5095_s20 = sld [smem:[%s5655_s0 + %s4924_s22]]   ;;  %s4928_s22 = smov 32  }
  0x36   :  { %5687 = sst [smem:[#allocation30_spill]] %s5075_s21 }
  0x37   :  { %s5100_s13 = sld [smem:[%s5655_s0 + %s4925_s28]]   ;;  %s4929_s28 = smov 33  }
  0x38   :  { %5688 = sst [smem:[#allocation31_spill]] %s5085_s6 }
  0x39   :  { %s5105_s12 = sld [smem:[%s5655_s0 + %s4926_s7]]   ;;  %s4930_s7 = smov 34  }
  0x3a   :  { %s5110_s24 = sld [smem:[%s5655_s0 + %s4927_s15]]   ;;  %s4931_s15 = smov 35  }
  0x3b   :  { %s5115_s4 = sld [smem:[%s5655_s0 + %s4928_s22]]   ;;  %s4932_s22 = smov 36  }
  0x3c   :  { %s5120_s17 = sld [smem:[%s5655_s0 + %s4929_s28]]   ;;  %s4933_s28 = smov 37  }
  0x3d   :  { %s5125_s14 = sld [smem:[%s5655_s0 + %s4930_s7]]  }
  0x3e   :  { %s5130_s30 = sld [smem:[%s5655_s0 + %s4931_s15]]  }
  0x3f   :  { %s5135_s19 = sld [smem:[%s5655_s0 + %s4932_s22]]  }
  0x40   :  { %s5140_s5 = sld [smem:[%s5655_s0 + %s4933_s28]]  }
  0x46   :  { %5689 = sst [smem:[#allocation32_spill]] %s5140_s5 }
  0x47   :  { %80 = vsyncpa [#allocation5], 0  ;;  %s5142_s7 = smov 0  }
  0x48 LB: > { %5690 = sst [smem:[#allocation33_spill]] %s4895_s7  ;;  %s5148_s10 = sadd.s32 4294967295, %s4895_s7   ;;  %s4895_s7 = sphi %s5142_s7, %s86_s7  }
  0x49   : > { %p4172_p0 = scmp.ge.s32.totalorder %s4895_s7, 1  ;;  %p1136_p1 = scmp.lt.s32.totalorder %s4895_s7, 3 }
  0x4b   : > { %p1137_p2 = pnand %p4172_p0, %p1136_p1 }
  0x4c   : > { %s5693_s6 = sld [smem:[#allocation31_spill]] (!%p1137_p2)  ;;  %p1273_p3 = scmp.lt.s32.totalorder (!%p1137_p2), %s5148_s10, 1 }
  0x4d   : > { %1140 = sbr.rel (%p1137_p2) target bundleno = 5454 (0x154e), region = 168  ;;  %p4185_p4 = scmp.ne.s32.totalorder (!%p1137_p2), %s5148_s10, 0 }
  0x54   : > { %s5154_s0 = scalar_select %p1273_p3, %s5148_s10, 1 }
  0x55   : > { %s5695_s23 = sld [smem:[#allocation8_spill]] (!%p4185_p4)  ;;  %v4702_v0 = vld [vmem:[%s4995_s8] sm:$0xff] (!%p4185_p4)   ;;  %v4934_v1 = vmov (!%p4185_p4), 0.0   ;;  %vm4935_vm0 = vmmov (!%p4185_p4), 0   ;;  %vm1347_vm1 = vcmask (!%p4185_p4), 130048   ;;  %s5705_s11 = sld [smem:[#allocation21_spill]] (!%p4185_p4) }
  0x56   : > { %s4637_s16 = smul.u32 96, %s5154_s0  ;;  %s4316_s18 = sshll.u32 %s5154_s0, 7  ;;  %4437 = vmatprep.subr.bf16.mxu0 (!%p4185_p4), %v4934_v1  ;;  %4443 = vmatprep.subr.bf16.mxu1 (!%p4185_p4), %v4934_v1  ;;  %vm1750_vm2 = vcmask (!%p4185_p4), 254976   ;;  %vm1901_vm3 = vcmask (!%p4185_p4), 261120  }
  0x57   : > { %s5163_s22 = scalar_lea.vmem %s5693_s6, %s4316_s18  ;;  %s4317_s28 = sshll.u32 %s5154_s0, 5  ;;  %4438 = vmatpush3.bf16.msra.mxu0 (!%p4185_p4), %v4702_v0  ;;  %4439 = vmatprep.mubr.msk.bf16.mxu0 (!%p4185_p4), %vm4935_vm0, %v4934_v1 }
  0x58   : > { %s5168_s26 = scalar_lea.vmem %s5080_s27, %s4637_s16  ;;  %s5172_s1 = scalar_lea.vmem %s5095_s20, %s4317_s28  ;;  %4445 = vmatprep.mubr.msk.bf16.mxu1 (!%p4185_p4), %vm4935_vm0, %v4934_v1  ;;  %4449 = vmatprep.subr.bf16.mxu0 (!%p4185_p4), %v4934_v1 }
  0x59   : > { %s5175_s2 = scalar_lea.vmem %s5100_s13, %s4316_s18  ;;  %s1304_s7 = scalar_lea.vmem %s5105_s12, %s5154_s0 }
  0x5a   : > { %s1307_s5 = scalar_lea.vmem %s5110_s24, %s5154_s0  ;;  %s5184_s25 = scalar_lea.vmem %s5120_s17, %s4317_s28 }
  0x5b   : > { %s4182_s15 = sshll.u32 %s5154_s0, 1  ;;  %s4320_s21 = sshll.u32 %s5154_s0, 6  ;;  %v1337_v3 = vld [vmem:[%s5695_s23] sm:$0x3] (!%p4185_p4) }
  0x5c   : > { %s5189_s9 = scalar_lea.vmem %s5125_s14, %s4182_s15  ;;  %s5192_s3 = scalar_lea.vmem %s5130_s30, %s4320_s21  ;;  %v1338_v5 = vpack.c.bf16 (!%p4185_p4), %v1337_v3, %v1337_v3 }
  0x5d   : > { %1332 = sbr.rel (%p4185_p4) target bundleno = 830 (0x33e), region = 172  ;;  %s5694_s16 = sld [smem:[#allocation14_spill]] (!%p4185_p4) }
  0x5e   : > { %s5696_s18 = sld [smem:[#allocation7_spill]] (!%p4185_p4)  ;;  %s5697_s15 = sld [smem:[#allocation16_spill]] (!%p4185_p4)  ;;  %4440 = vmatmul.mubr.msk.bf16.vlgmr.msra.gmra.mrb[0].mxu0 (!%p4185_p4), %vm1347_vm1, %v1338_v5 }
  0x5f   : > { %4465 = vmatprep.mubr.msk.bf16.mxu0 (!%p4185_p4), %vm4935_vm0, %v4934_v1  ;;  %s5698_s21 = sld [smem:[#allocation18_spill]] (!%p4185_p4)  ;;  %s5699_s23 = sld [smem:[#allocation15_spill]] (!%p4185_p4) }
  0x60   : > { %s5700_s28 = sld [smem:[#allocation10_spill]] (!%p4185_p4)  ;;  %s5704_s6 = sld [smem:[#allocation9_spill]] (!%p4185_p4) }
  0x63   : > { %v4703_v2 = vld [vmem:[%s5694_s16] sm:$0xff] (!%p4185_p4)   ;;  %s5701_s16 = sld [smem:[#allocation23_spill]] (!%p4185_p4) }
  0x64   : > { %v1333_v4 = vld [vmem:[%s5696_s18] sm:$0x3]  ;;  %4444 = vmatpush3.bf16.msra.mxu1 %v4703_v2  ;;  %v4705_v8 = vld [vmem:[%s5697_s15 + $0x8] sm:$0xff]   ;;  %v4706_v9 = vld [vmem:[%s5697_s15 + $0x10] sm:$0xff]   ;;  %s5702_s18 = sld [smem:[#allocation17_spill]] }
  0x65   : > { %v1334_v6 = vpack.c.bf16 %v1333_v4, %v1333_v4  ;;  %4469 = vmatprep.subr.bf16.mxu1 %v4934_v1  ;;  %v4704_v7 = vld [vmem:[%s5697_s15] sm:$0xff]   ;;  %v4707_v10 = vld [vmem:[%s5697_s15 + $0x18] sm:$0xff]   ;;  %v4709_v12 = vld [vmem:[%s5697_s15 + $0x28] sm:$0xff]  }
  0x66   : > { %4450 = vmatpush3.bf16.msra.mxu0 %v4704_v7  ;;  %v4708_v11 = vld [vmem:[%s5697_s15 + $0x20] sm:$0xff]   ;;  %v4710_v13 = vld [vmem:[%s5697_s15 + $0x30] sm:$0xff]   ;;  %v4711_v14 = vld [vmem:[%s5697_s15 + $0x38] sm:$0xff]  }
  0x67   : > { %4446 = vmatmul.mubr.msk.bf16.vlgmr.msra.gmra.mrb[0].mxu1 %vm1347_vm1, %v1334_v6  ;;  %4451 = vmatprep.subr.bf16.mxu0 %v4934_v1  ;;  %v4712_v15 = vld [vmem:[%s5698_s21] sm:$0xff]   ;;  %v4713_v37 = vld [vmem:[%s5698_s21 + $0x8] sm:$0xff]   ;;  %v4714_v38 = vld [vmem:[%s5698_s21 + $0x10] sm:$0xff]  }
  0x68   : > { %4485 = vmatprep.mubr.msk.bf16.mxu1 %vm4935_vm0, %v4934_v1  ;;  %4470 = vmatpush3.bf16.msra.mxu1 %v4712_v15  ;;  %v4190_v18 = vld [vmem:[%s5699_s23] ss:$0 sm:$0xff]  ;;  %v4715_v39 = vld [vmem:[%s5698_s21 + $0x18] sm:$0xff]   ;;  %v4717_v41 = vld [vmem:[%s5698_s21 + $0x28] sm:$0xff]   ;;  %s5703_s23 = sld [smem:[#allocation20_spill]] }
  0x69   : > { %4471 = vmatprep.subr.bf16.mxu1 %v4934_v1  ;;  %v4716_v40 = vld [vmem:[%s5698_s21 + $0x20] sm:$0xff]   ;;  %v4718_v42 = vld [vmem:[%s5698_s21 + $0x30] sm:$0xff]   ;;  %v4719_v43 = vld [vmem:[%s5698_s21 + $0x38] sm:$0xff]  }
  0x6a   : > { %4452 = vmatpush3.bf16.msra.mxu0 %v4705_v8  ;;  %v1690_v44 = vld [vmem:[%s5700_s28] sm:$0x3]  ;;  %s5706_s28 = sld [smem:[#allocation24_spill]]  ;;  %v1753_v2 = vld [vmem:[%s5704_s6 + $0x8] sm:$0xff] }
  0x6b   : > { %4453 = vmatprep.subr.bf16.mxu0 %v4934_v1  ;;  %v4722_v45 = vld [vmem:[%s5701_s16] sm:$0xff]   ;;  %v1691_v46 = vpack.c.bf16 %v1690_v44, %v1690_v44  ;;  %s5707_s16 = sld [smem:[#allocation19_spill]] }
  0x6c   : > { %4472 = vmatpush3.bf16.msra.mxu1 %v4713_v37  ;;  %v4191_v47 = vld [vmem:[%s5702_s18] ss:$0 sm:$0xff]  ;;  %s5708_s18 = sld [smem:[#allocation22_spill]] }
  0x6d   : > { %4473 = vmatprep.subr.bf16.mxu1 %v4934_v1  ;;  %v1752_v0 = vld [vmem:[%s5704_s6] sm:$0xff] }
  0x6e   : > { %4454 = vmatpush3.bf16.msra.mxu0 %v4706_v9  ;;  %v4720_v62 = vld [vmem:[%s5703_s23] sm:$0xff]   ;;  %v1754_v3 = vpack.c.bf16 %v1753_v2, %v1752_v0 }
  0x6f   : > { %4455 = vmatprep.subr.bf16.mxu0 %v4934_v1  ;;  %v4721_v4 = vld [vmem:[%s5705_s11] sm:$0xff]   ;;  %s5709_s11 = sld [smem:[#allocation11_spill]] }
  0x70   : > { %4474 = vmatpush3.bf16.msra.mxu1 %v4714_v38  ;;  %v4209_v8 = vld [vmem:[%s5706_s28] ss:$0 sm:$0xff] }
  0x71   : > { %4475 = vmatprep.subr.bf16.mxu1 %v4934_v1 }
  0x72   : > { %4456 = vmatpush3.bf16.msra.mxu0 %v4707_v10 }
  0x73   : > { %4457 = vmatprep.subr.bf16.mxu0 %v4934_v1 }
  0x74   : > { %4476 = vmatpush3.bf16.msra.mxu1 %v4715_v39 }
  0x75   : > { %4477 = vmatprep.subr.bf16.mxu1 %v4934_v1 }
  0x76   : > { %4458 = vmatpush3.bf16.msra.mxu0 %v4708_v11  ;;  %v4936_v11 = vmov 1966171168  }
  0x77   : > { %4459 = vmatprep.subr.bf16.mxu0 %v4934_v1 }
  0x78   : > { %4478 = vmatpush3.bf16.msra.mxu1 %v4716_v40 }
  0x79   : > { %4479 = vmatprep.subr.bf16.mxu1 %v4934_v1 }
  0x7a   : > { %4460 = vmatpush3.bf16.msra.mxu0 %v4709_v12  ;;  %v1865_v12 = vunpack.c.l.s4 %v4936_v11 }
  0x7b   : > { %4461 = vmatprep.subr.bf16.mxu0 %v4934_v1 }
  0x7c   : > { %4480 = vmatpush3.bf16.msra.mxu1 %v4717_v41 }
  0x7d   : > { %4481 = vmatprep.subr.bf16.mxu1 %v4934_v1 }
  0x7e   : > { %4462 = vmatpush3.bf16.msra.mxu0 %v4710_v13  ;;  %v1867_v13 = vlaneseq }
  0x7f   : > { %4463 = vmatprep.subr.bf16.mxu0 %v4934_v1 }
  0x80   : > { %4482 = vmatpush3.bf16.msra.mxu1 %v4718_v42 }
  0x81   : > { %4483 = vmatprep.subr.bf16.mxu1 %v4934_v1 }
  0x82   : > { %4464 = vmatpush3.bf16.msra.mxu0 %v4711_v14 }
  0x83   : > { %4489 = vmatprep.subr.bf16.mxu0 %v4934_v1 }
  0x84   : > { %4484 = vmatpush3.bf16.msra.mxu1 %v4719_v43 }
  0x85   : > { %4495 = vmatprep.subr.bf16.mxu1 %v4934_v1 }
 0x131   : > { %v1385_v16 = vpop.f32.mrb[0].mxu0 }
 0x132   : > { %v4441_v19 = vpop.f32.mrb[1].mxu0 }
 0x133   : > { %v1388_v22 = vpop.f32.mrb[2].mxu0  ;;  %v1866_v19 = vunpack.c.0.s8 %v1865_v12 }
 0x134   : > { %v4442_v24 = vpop.f32.mrb[3].mxu0 }
 0x13a   : > { %v1434_v17 = vpop.f32.mrb[0].mxu1 }
 0x13b   : > { %v1435_v20 = vadd.f32 %v1434_v17, %v1385_v16  ;;  %v4447_v21 = vpop.f32.mrb[1].mxu1  ;;  %v4200_v17 = vld [vmem:[%s5707_s16] ss:$0 sm:$0xff] }
 0x13c   : > { %v1437_v23 = vpop.f32.mrb[2].mxu1 }
 0x13d   : > { %v1447_v25 = vadd.f32 %v4190_v18, %v1435_v20  ;;  %v4448_v26 = vpop.f32.mrb[3].mxu1  ;;  %v1868_v20 = vshrl.u32 %v1867_v13, 7 }
 0x13f   : > { %v1449_v27 = vmul.f32 0.044715, %v1447_v25  ;;  %v1448_v33 = vmul.f32 0.5, %v1447_v25  ;;  %v1869_v22 = vsub.s32 %v1866_v19, %v1868_v20 }
 0x141   : > { %v1450_v28 = vmul.f32 %v1449_v27, %v1447_v25 }
 0x143   : > { %v1451_v29 = vmul.f32 %v1450_v28, %v1447_v25  ;;  %v1888_v28 = vsub.s32 0, %v1868_v20 }
 0x145   : > { %v1452_v30 = vadd.f32 %v1451_v29, %v1447_v25 }
 0x147   : > { %v1453_v31 = vmul.f32 0.7978846, %v1452_v30 }
 0x149   : > { %4723 = vtanh.f32 %v1453_v31 }
 0x153   : > { %v4724_v32 = vpop.eup %4723 }
 0x154   : > { %v1455_v34 = vadd.f32 1.0, %v4724_v32 }
 0x156   : > { %v1456_v35 = vmul.f32 %v1455_v34, %v1448_v33  ;;  %v1898_v34 = vld [vmem:[%s5709_s11] sm:$0xff] }
 0x158   : > { %v1457_v36 = vpack.c.bf16 %v1456_v35, %v1456_v35 }
 0x15a   : > { %4466 = vmatmul.mubr.bf16.vlgmr.msra.gmra.mrb[4].mxu0 %v1457_v36 }
 0x15b   : > { %4491 = vmatprep.mubr.msk.bf16.mxu0 %vm4935_vm0, %v4934_v1  ;;  %4490 = vmatpush3.bf16.msra.mxu0 %v4722_v45 }
 0x162   : > { %4492 = vmatmul.mubr.msk.bf16.vlgmr.msra.gmra.mrb[8].mxu0 %vm1347_vm1, %v1691_v46 }
 0x22d   : > { %v1563_v48 = vpop.f32.mrb[4].mxu0 }
 0x22e   : > { %v1564_v49 = vadd.f32 %v4191_v47, %v1563_v48  ;;  %v4467_v50 = vpop.f32.mrb[5].mxu0 }
 0x22f   : > { %v1566_v51 = vpop.f32.mrb[6].mxu0 }
 0x230   : > { %v1570_v52 = vmul.f32 0.044715, %v1564_v49  ;;  %v4468_v53 = vpop.f32.mrb[7].mxu0  ;;  %v1569_v59 = vmul.f32 0.5, %v1564_v49 }
 0x232   : > { %v1571_v54 = vmul.f32 %v1570_v52, %v1564_v49 }
 0x234   : > { %v1572_v55 = vmul.f32 %v1571_v54, %v1564_v49 }
 0x235   : > { %v1744_v5 = vpop.f32.mrb[8].mxu0 }
 0x236   : > { %v1573_v56 = vadd.f32 %v1572_v55, %v1564_v49  ;;  %v4493_v6 = vpop.f32.mrb[9].mxu0  ;;  %v1745_v10 = vadd.f32 %v4209_v8, %v1744_v5 }
 0x237   : > { %v1747_v7 = vpop.f32.mrb[10].mxu0 }
 0x238   : > { %v1574_v57 = vmul.f32 0.7978846, %v1573_v56  ;;  %v4494_v9 = vpop.f32.mrb[11].mxu0  ;;  %1751 = vst.msk [vmem:[#allocation3] sm:$0x3] %vm1750_vm2, %v1745_v10 }
 0x23a   : > { %4725 = vtanh.f32 %v1574_v57 }
 0x244   : > { %v4726_v58 = vpop.eup %4725 }
 0x245   : > { %v1576_v60 = vadd.f32 1.0, %v4726_v58 }
 0x247   : > { %v1577_v61 = vmul.f32 %v1576_v60, %v1569_v59 }
 0x249   : > { %v1578_v63 = vpack.c.bf16 %v1577_v61, %v1577_v61 }
 0x24b   : > { %4486 = vmatmul.mubr.bf16.vlgmr.msra.gmra.mrb[4].mxu1 %v1578_v63 }
 0x24c   : > { %4496 = vmatpush3.bf16.msra.mxu1 %v4720_v62  ;;  %4497 = vmatprep.mubr.msk.bf16.mxu1 %vm4935_vm0, %v4934_v1 }
 0x24d   : > { %4501 = vmatprep.subr.bf16.mxu1 %v4934_v1 }
 0x253   : > { %4498 = vmatmul.mubr.msk.bf16.vlgmr.msra.gmra.mrb[8].mxu1 %vm1347_vm1, %v1754_v3 }
 0x254   : > { %4502 = vmatpush3.bf16.msra.mxu1 %v4721_v4  ;;  %4503 = vmatprep.mubr.msk.bf16.mxu1 %vm4935_vm0, %v4934_v1  ;;  %v4214_v1 = vld [vmem:[%s5708_s18] ss:$0 sm:$0xff] }
 0x255   : > { %v4631_v21 = vadd.f32 %v4214_v1, %v4200_v17 }
 0x25b   : > { %4504 = vmatmul.mubr.msk.bf16.vlgmr.msra.gmra.mrb[4].mxu1 %vm1347_vm1, %v1691_v46 }
 0x326   : > { %v1800_v14 = vpop.f32.mrb[8].mxu1 }
 0x327   : > { %v4499_v15 = vpop.f32.mrb[9].mxu1 }
 0x328   : > { %v1803_v16 = vpop.f32.mrb[10].mxu1 }
 0x329   : > { %v4500_v18 = vpop.f32.mrb[11].mxu1 }
 0x32e   : > { %v1856_v23 = vpop.f32.mrb[4].mxu1 }
 0x32f   : > { %v4632_v24 = vadd.f32 %v4631_v21, %v1856_v23  ;;  %v4505_v25 = vpop.f32.mrb[5].mxu1 }
 0x330   : > { %v1859_v26 = vpop.f32.mrb[6].mxu1 }
 0x331   : > { %v1870_v27 = vrot.slane %v4632_v24, %v1869_v22  ;;  %v4506_v29 = vpop.f32.mrb[7].mxu1 }
 0x333   : > { %v1871_v30 = vcombine.high %v1870_v27, %v1870_v27  ;;  %v1878_v31 = vrot.slane %v1870_v27, %v1869_v22 }
 0x335   : > { %v1885_v32 = vrot.slane %v1871_v30, %v1869_v22  ;;  %v1889_v33 = vrot.slane %v1878_v31, %v1888_v28 }
 0x337   : > { %v1893_v35 = vrot.slane %v1885_v32, %v1888_v28  ;;  %v1896_v36 = vadd.f32 %v1889_v33, %v1800_v14 }
 0x339   : > { %v1897_v37 = vadd.f32 %v1893_v35, %v1803_v16  ;;  %v1899_v38 = vadd.f32 %v1898_v34, %v1896_v36 }
 0x33b   : > { %v1900_v39 = vadd.f32 %v1898_v34, %v1897_v37  ;;  %1902 = vst.msk [vmem:[#allocation2] sm:$0xff] %vm1901_vm3, %v1899_v38 }
 0x33d   : > { %1903 = vst.msk [vmem:[#allocation2 + $0x8] sm:$0xff] %vm1901_vm3, %v1900_v39 }
 0x33e PF: > { %vm1928_vm4 = vcmask 261120   ;;  %v4737_v54 = vld [vmem:[%s5168_s26 + $0x4] ss:$24 sps:$4 sm:$0xff]   ;;  %v4739_v55 = vld [vmem:[%s5168_s26] ss:$24 sps:$4 sm:$0xff]   ;;  %v4937_v58 = vmov 0  }
 0x33f   : > { %2048 = vmatprep.subr.bf16.mxu0 %v4737_v54  ;;  %v4740_v56 = vld [vmem:[%s5168_s26 + $0x34] ss:$24 sps:$4 sm:$0xff]   ;;  %v4742_v57 = vld [vmem:[%s5168_s26 + $0x30] ss:$24 sps:$4 sm:$0xff]   ;;  %s5710_s23 = sld [smem:[#allocation29_spill]]  ;;  %2080 = vmatprep.mubr.bf16.mxu0 %v4937_v58  ;;  %s5711_s28 = sld [smem:[#allocation30_spill]] }
 0x340   : > { %2049 = vmatpush1.bf16.msra.mxu0 %v4739_v55  ;;  %v4745_v59 = vld [vmem:[%s5168_s26 + $0xc] ss:$24 sps:$4 sm:$0xff]   ;;  %v4743_v13 = vld [vmem:[%s5168_s26 + $0x8] ss:$24 sps:$4 sm:$0xff]   ;;  %v4748_v15 = vld [vmem:[%s5168_s26 + $0x3c] ss:$24 sps:$4 sm:$0xff]  }
 0x341   : > { %2050 = vmatprep.subr.bf16.mxu0 %v4740_v56  ;;  %v4746_v16 = vld [vmem:[%s5168_s26 + $0x38] ss:$24 sps:$4 sm:$0xff]   ;;  %v4751_v17 = vld [vmem:[%s5168_s26 + $0x14] ss:$24 sps:$4 sm:$0xff]   ;;  %v4754_v18 = vld [vmem:[%s5168_s26 + $0x44] ss:$24 sps:$4 sm:$0xff]  }
 0x342   : > { %v1904_v40 = vld [vmem:[#allocation2] sm:$0xff]  ;;  %v4749_v1 = vld [vmem:[%s5168_s26 + $0x10] ss:$24 sps:$4 sm:$0xff]   ;;  %v4938_v20 = vmov 0.0   ;;  %vm4939_vm5 = vmmov 0   ;;  %vm2189_vm6 = vcmask 523264  }
 0x343   : > { %v1929_v42 = vsel %vm1928_vm4, %v1904_v40, 0.0  ;;  %v4752_v19 = vld [vmem:[%s5168_s26 + $0x40] ss:$24 sps:$4 sm:$0xff]   ;;  %4507 = vmatprep.subr.bf16.mxu1 %v4938_v20  ;;  %4509 = vmatprep.mubr.msk.bf16.mxu1 %vm4939_vm5, %v4938_v20  ;;  %vm2316_vm7 = vcmask 1043456   ;;  %s5714_s26 = sld [smem:[#allocation12_spill]]  ;;  %s5715_s11 = sld [smem:[#allocation13_spill]] }
 0x344   : > { %v1905_v41 = vld [vmem:[#allocation2 + $0x8] sm:$0xff]  ;;  %1930 = vadd.xlane.f32.xlu0 %v1929_v42  ;;  %2051 = vmatpush1.bf16.msra.mxu0 %v4742_v57  ;;  %vm2288_vm11 = vcmask 64512   ;;  %p4305_p5 = scmp.ne.s32.totalorder %s5148_s10, 1 }
 0x345   : > { %v1932_v43 = vsel %vm1928_vm4, %v1905_v41, 0.0  ;;  %2091 = vmatprep.subr.bf16.mxu0 %v4745_v59  ;;  %s5712_s16 = scalar_lea.vmem %s5710_s23, %s5154_s0  ;;  %s5713_s18 = scalar_lea.vmem %s5711_s28, %s5154_s0  ;;  %vm4943_vm13 = vmmov (!%p4305_p5), 0   ;;  %vm3946_vm14 = vcmask (!%p4305_p5), 130048  }
 0x346   : > { %v4217_v5 = vld [vmem:[%s5712_s16] ss:$0 sm:$0xff]  ;;  %s4940_s23 = smov 64  }
 0x347   : > { %v4218_v9 = vld [vmem:[%s5713_s18] ss:$0 sm:$0xff] }
 0x348   : > { %1933 = vadd.xlane.f32.xlu0 %v1932_v43  ;;  %v1912_v43 = vlaneseq }
 0x3d1   : > { %v1931_v44 = vpop.xlane.xlu0 %1930 }
 0x3d2   : > { %v1936_v45 = vmul.f32 0.03125, %v1931_v44  ;;  %v1906_v44 = vld [vmem:[%s5714_s26] sm:$0x1] }
 0x3d3   : > { %vm1908_vm8 = vcmp.gt.f32.partialorder %v1906_v44, 0.5 }
 0x3d4   : > { %v1938_v46 = vsub.f32 %v1904_v40, %v1936_v45  ;;  %v5345_v45 = vshrl.u32 %v1912_v43, 7 }
 0x3d5   : > { %v1934_v47 = vpop.xlane.xlu0 %1933 }
 0x3d6   : > { %v1937_v48 = vmul.f32 0.03125, %v1934_v47  ;;  %v1940_v49 = vmul.f32 %v1938_v46, %v1938_v46  ;;  %v5349_v47 = vsub.s32 0, %v5345_v45 }
 0x3d8   : > { %v1939_v50 = vsub.f32 %v1905_v41, %v1937_v48  ;;  %v1942_v51 = vsel %vm1928_vm4, %v1940_v49, 0.0  ;;  %v1910_v48 = vsel %vm1908_vm8, 1, %v4937_v58 }
 0x3d9   : > { %1943 = vadd.xlane.f32.xlu1 %v1942_v51  ;;  %v1922_v51 = vld [vmem:[%s5715_s11] sm:$0xff] }
 0x3da   : > { %v1941_v52 = vmul.f32 %v1939_v50, %v1939_v50 }
 0x3dc   : > { %v1945_v53 = vsel %vm1928_vm4, %v1941_v52, 0.0 }
 0x3dd   : > { %1946 = vadd.xlane.f32.xlu1 %v1945_v53 }
 0x466   : > { %v1944_v60 = vpop.xlane.xlu1 %1943 }
 0x467   : > { %v1948_v61 = vmul.f32 0.03125, %v1944_v60 }
 0x469   : > { %v1950_v62 = vadd.f32 1e-05, %v1948_v61 }
 0x46a   : > { %v1947_v63 = vpop.xlane.xlu1 %1946 }
 0x46b   : > { %4807 = vrsqrt.f32 %v1950_v62  ;;  %v1949_v0 = vmul.f32 0.03125, %v1947_v63 }
 0x46d   : > { %v1951_v2 = vadd.f32 1e-05, %v1949_v0 }
 0x46f   : > { %4809 = vrsqrt.f32 %v1951_v2 }
 0x475   : > { %v4808_v3 = vpop.eup %4807 }
 0x476   : > { %v1954_v4 = vmul.f32 %v4808_v3, %v1938_v46  ;;  %v1907_v46 = vld [vmem:[%s5714_s26 + $0x1] sm:$0x1] }
 0x477   : > { %vm1909_vm9 = vcmp.gt.f32.partialorder %v1907_v46, 0.5 }
 0x478   : > { %v1962_v8 = vmul.f32 %v4217_v5, %v1954_v4  ;;  %v1911_v49 = vsel %vm1909_vm9, 1, %v4937_v58 }
 0x479   : > { %v4810_v6 = vpop.eup %4809  ;;  %v1919_v53 = vrot.slane %v1911_v49, %v5349_v47 }
 0x47a   : > { %v1955_v7 = vmul.f32 %v4810_v6, %v1939_v50  ;;  %v1970_v11 = vadd.f32 %v4218_v9, %v1962_v8  ;;  %v1915_v50 = vrot.slane %v1910_v48, %v5349_v47 }
 0x47b   : > { %vm5360_vm12 = vcmp.eq.s32.totalorder %v1919_v53, 1 }
 0x47c   : > { %v1963_v10 = vmul.f32 %v4217_v5, %v1955_v7  ;;  %vm5356_vm10 = vcmp.eq.s32.totalorder %v1915_v50, 1 }
 0x47e   : > { %v1971_v12 = vadd.f32 %v4218_v9, %v1963_v10 }
 0x480   : > { %v1972_v14 = vpack.c.bf16 %v1971_v12, %v1970_v11 }
 0x482   : > { %4231 = vmatmul.mubr.msk.bf16.vlgmr.msra.gmra.mrb[0].mxu0 %vm1928_vm4, %v1972_v14 }
 0x483   : > { %2092 = vmatpush1.bf16.msra.mxu0 %v4743_v13  ;;  %2123 = vmatprep.mubr.bf16.mxu0 %v4937_v58 }
 0x484   : > { %2093 = vmatprep.subr.bf16.mxu0 %v4748_v15 }
 0x487   : > { %2094 = vmatpush1.bf16.msra.mxu0 %v4746_v16 }
 0x488   : > { %2134 = vmatprep.subr.bf16.mxu0 %v4751_v17 }
 0x48a   : > { %4232 = vmatmul.mubr.msk.bf16.vlgmr.msra.gmra.mrb[4].mxu0 %vm1928_vm4, %v1972_v14 }
 0x48b   : > { %2135 = vmatpush1.bf16.msra.mxu0 %v4749_v1  ;;  %2166 = vmatprep.mubr.bf16.mxu0 %v4937_v58 }
 0x48c   : > { %2136 = vmatprep.subr.bf16.mxu0 %v4754_v18 }
 0x48f   : > { %2137 = vmatpush1.bf16.msra.mxu0 %v4752_v19 }
 0x490   : > { %4513 = vmatprep.subr.bf16.mxu0 %v4938_v20 }
 0x492   : > { %4233 = vmatmul.mubr.msk.bf16.vlgmr.msra.gmra.mrb[8].mxu0 %vm1928_vm4, %v1972_v14 }
 0x493   : > { %4515 = vmatprep.mubr.msk.bf16.mxu0 %vm4939_vm5, %v4938_v20 }
 0x555   : > { %v2082_v21 = vpop.f32.mrb[0].mxu0 }
 0x556   : > { %v5303_v22 = vpop.f32.mrb[1].mxu0  ;;  %v5318_v34 = vpack.c.bf16 %v2082_v21, %v2082_v21 }
 0x557   : > { %v2086_v23 = vpop.f32.mrb[2].mxu0 }
 0x558   : > { %v5305_v24 = vpop.f32.mrb[3].mxu0  ;;  %v5324_v38 = vpack.c.bf16 %v2086_v23, %v2086_v23 }
 0x55d   : > { %v2125_v25 = vpop.f32.mrb[4].mxu0 }
 0x55e   : > { %v5307_v26 = vpack.c.bf16 %v2125_v25, %v2125_v25  ;;  %v5309_v27 = vpop.f32.mrb[5].mxu0 }
 0x55f   : > { %v2129_v28 = vpop.f32.mrb[6].mxu0 }
 0x560   : > { %v2185_v29 = vpack.c.bf16 %v2129_v28, %v2129_v28  ;;  %v5311_v30 = vpop.f32.mrb[7].mxu0  ;;  %v2194_v31 = vsel %vm2189_vm6, %v5307_v26, 0 }
 0x561   : > { %4508 = vmatpush3.bf16.xpose.msra.mxu1 %v2194_v31 }
 0x562   : > { %v2240_v32 = vsel %vm2189_vm6, %v2185_v29, 0  ;;  %4519 = vmatprep.subr.bf16.mxu1 %v4938_v20 }
 0x563   : > { %4514 = vmatpush3.bf16.xpose.msra.mxu0 %v2240_v32 }
 0x564   : > { %4525 = vmatprep.subr.bf16.mxu0 %v4938_v20 }
 0x565   : > { %v2168_v33 = vpop.f32.mrb[8].mxu0 }
 0x566   : > { %v5320_v35 = vpack.c.bf16 %v2168_v33, %v2168_v33  ;;  %v5322_v36 = vpop.f32.mrb[9].mxu0 }
 0x567   : > { %v2172_v37 = vpop.f32.mrb[10].mxu0 }
 0x568   : > { %v2318_v39 = vsel %vm2316_vm7, %v5320_v35, 0  ;;  %v5328_v40 = vpack.c.bf16 %v2172_v37, %v2172_v37  ;;  %v5330_v41 = vpop.f32.mrb[11].mxu0  ;;  %4510 = vmatmul.mubr.msk.bf16.vlgmr.msra.gmra.mrb[0].mxu1 %vm2189_vm6, %v5318_v34 }
 0x569   : > { %4520 = vmatpush3.bf16.msra.mxu1 %v2318_v39  ;;  %4521 = vmatprep.mubr.msk.bf16.mxu1 %vm4939_vm5, %v4938_v20 }
 0x56a   : > { %v2364_v42 = vsel %vm2316_vm7, %v5328_v40, 0  ;;  %4516 = vmatmul.mubr.msk.bf16.vlgmr.msra.gmra.mrb[12].mxu0 %vm2189_vm6, %v5324_v38  ;;  %4531 = vmatprep.subr.bf16.mxu1 %v4938_v20 }
 0x56b   : > { %4526 = vmatpush3.bf16.msra.mxu0 %v2364_v42  ;;  %4527 = vmatprep.mubr.msk.bf16.mxu0 %vm4939_vm5, %v4938_v20 }
 0x56c   : > { %4537 = vmatprep.subr.bf16.mxu0 %v4938_v20 }
 0x63b   : > { %v2230_v52 = vpop.f32.mrb[0].mxu1 }
 0x63c   : > { %v2282_v54 = vmul.f32 0.125, %v2230_v52  ;;  %v4511_v55 = vpop.f32.mrb[1].mxu1 }
 0x63d   : > { %v2233_v56 = vpop.f32.mrb[2].mxu1  ;;  %v2276_v57 = vpop.f32.mrb[12].mxu0 }
 0x63e   : > { %v2284_v60 = vadd.f32 %v2282_v54, %v1922_v51  ;;  %v2283_v61 = vmul.f32 0.125, %v2276_v57  ;;  %v4512_v62 = vpop.f32.mrb[3].mxu1  ;;  %v4517_v63 = vpop.f32.mrb[13].mxu0 }
 0x63f   : > { %v2279_v0 = vpop.f32.mrb[14].mxu0 }
 0x640   : > { %v2285_v3 = vadd.f32 %v2283_v61, %v1922_v51  ;;  %v4518_v4 = vpop.f32.mrb[15].mxu0  ;;  %v2286_v5 = vsel %vm5356_vm10, %v2284_v60, -3.4028235e+38  ;;  %v1923_v51 = vld [vmem:[%s5715_s11 + $0x8] sm:$0xff] }
 0x641   : > { %v2289_v6 = vsel %vm2288_vm11, %v2286_v5, -inf }
 0x642   : > { %2290 = vmax.xlane.f32.xlu0 %v2289_v6  ;;  %v2287_v7 = vsel %vm5360_vm12, %v2285_v3, -3.4028235e+38 }
 0x643   : > { %v2292_v8 = vsel %vm2288_vm11, %v2287_v7, -inf }
 0x644   : > { %2293 = vmax.xlane.f32.xlu1 %v2292_v8 }
 0x655   : > { %2462 = vrot.lane.b32.xlu1 %v2185_v29, %s4940_s23 }
 0x6cf   : > { %v2291_v9 = vpop.xlane.xlu0 %2290 }
 0x6d0   : > { %v2295_v10 = vsub.f32 %v2286_v5, %v2291_v9 }
 0x6d1   : > { %v2294_v11 = vpop.xlane.xlu1 %2293 }
 0x6d2   : > { %v2297_v12 = vmul.f32 1.442695, %v2295_v10  ;;  %v2296_v13 = vsub.f32 %v2287_v7, %v2294_v11 }
 0x6d4   : > { %4811 = vpow2.f32 %v2297_v12  ;;  %v2299_v14 = vmul.f32 1.442695, %v2296_v13 }
 0x6d5   : > { %v2463_v18 = vpop.permute.xlu1 %2462 }
 0x6d6   : > { %4813 = vpow2.f32 %v2299_v14 }
 0x6de   : > { %v4812_v15 = vpop.eup %4811 }
 0x6df   : > { %v2301_v16 = vsel %vm2288_vm11, %v4812_v15, 0.0 }
 0x6e0   : > { %v4814_v17 = vpop.eup %4813  ;;  %2302 = vadd.xlane.f32.xlu0 %v2301_v16 }
 0x6e1   : > { %v2304_v1 = vsel %vm2288_vm11, %v4814_v17, 0.0 }
 0x6e2   : > { %2305 = vadd.xlane.f32.xlu1 %v2304_v1 }
 0x6f3   : > { %2407 = vrot.lane.b32.xlu1 %v5318_v34, %s4940_s23 }
 0x6f6   : > { %2410 = vrot.lane.b32.xlu0 %v5307_v26, %s4940_s23  ;;  %v2468_v26 = vsel %vm2189_vm6, %v2463_v18, 0 }
 0x6f7   : > { %2459 = vrot.lane.b32.xlu1 %v5324_v38, %s4940_s23 }
 0x76d   : > { %v2303_v19 = vpop.xlane.xlu0 %2302 }
 0x76e   : > { %4815 = vrcp.f32 %v2303_v19 }
 0x76f   : > { %v2306_v21 = vpop.xlane.xlu1 %2305 }
 0x770   : > { %4817 = vrcp.f32 %v2306_v21 }
 0x771   : > { %v2411_v29 = vpop.permute.xlu0 %2410 }
 0x772   : > { %v2416_v33 = vsel %vm2189_vm6, %v2411_v29, 0  ;;  %v5418_v29 = vpack.c.bf16 %v5309_v27, %v5309_v27  ;;  %v5434_v27 = vpack.c.bf16 %v5322_v36, %v5322_v36 }
 0x773   : > { %v2408_v37 = vpop.permute.xlu1 %2407 }
 0x777   : > { %v2460_v38 = vpop.permute.xlu1 %2459 }
 0x778   : > { %v4816_v23 = vpop.eup %4815 }
 0x779   : > { %v2308_v25 = vmul.f32 %v4816_v23, %v4812_v15 }
 0x77a   : > { %v4818_v28 = vpop.eup %4817 }
 0x77b   : > { %v2310_v31 = vmul.f32 %v4818_v28, %v4814_v17  ;;  %v2311_v32 = vpack.c.bf16 %v2308_v25, %v2308_v25 }
 0x77d   : > { %4522 = vmatmul.mubr.msk.bf16.vlgmr.msra.gmra.mrb[4].mxu1 %vm2288_vm11, %v2311_v32  ;;  %v2312_v34 = vpack.c.bf16 %v2310_v31, %v2310_v31 }
 0x77e   : > { %4532 = vmatpush3.bf16.xpose.msra.mxu1 %v2416_v33  ;;  %4533 = vmatprep.mubr.msk.bf16.mxu1 %vm4939_vm5, %v4938_v20 }
 0x77f   : > { %4528 = vmatmul.mubr.msk.bf16.vlgmr.msra.gmra.mrb[16].mxu0 %vm2288_vm11, %v2312_v34  ;;  %4543 = vmatprep.subr.bf16.mxu1 %v4938_v20  ;;  %v2642_v34 = vsel %vm2189_vm6, %v5418_v29, 0 }
 0x780   : > { %4538 = vmatpush3.bf16.xpose.msra.mxu0 %v2468_v26  ;;  %4539 = vmatprep.mubr.msk.bf16.mxu0 %vm4939_vm5, %v4938_v20 }
 0x781   : > { %4549 = vmatprep.subr.bf16.mxu0 %v4938_v20 }
 0x785   : > { %4534 = vmatmul.mubr.msk.bf16.vlgmr.msra.gmra.mrb[8].mxu1 %vm2189_vm6, %v2408_v37 }
 0x786   : > { %4545 = vmatprep.mubr.msk.bf16.mxu1 %vm4939_vm5, %v4938_v20 }
 0x787   : > { %4540 = vmatmul.mubr.msk.bf16.vlgmr.msra.gmra.mrb[20].mxu0 %vm2189_vm6, %v2460_v38  ;;  %v5441_v38 = vpack.c.bf16 %v5330_v41, %v5330_v41 }
 0x788   : > { %4551 = vmatprep.mubr.msk.bf16.mxu0 %vm4939_vm5, %v4938_v20 }
 0x850   : > { %v5395_v39 = vpop.f32.mrb[4].mxu1 }
 0x851   : > { %v4523_v42 = vpop.f32.mrb[5].mxu1 }
 0x852   : > { %v2357_v43 = vpop.f32.mrb[6].mxu1  ;;  %v5397_v44 = vpop.f32.mrb[16].mxu0  ;;  %v2184_v42 = vpack.c.bf16 %v5305_v24, %v5305_v24 }
 0x853   : > { %v4524_v46 = vpop.f32.mrb[7].mxu1  ;;  %v4529_v48 = vpop.f32.mrb[17].mxu0  ;;  %v2764_v43 = vsel %vm2316_vm7, %v5434_v27, 0 }
 0x854   : > { %v2403_v49 = vpop.f32.mrb[18].mxu0 }
 0x855   : > { %v4530_v50 = vpop.f32.mrb[19].mxu0 }
 0x858   : > { %v2452_v52 = vpop.f32.mrb[8].mxu1 }
 0x859   : > { %v2510_v53 = vmul.f32 0.125, %v2452_v52  ;;  %v4535_v54 = vpop.f32.mrb[9].mxu1 }
 0x85a   : > { %v2455_v55 = vpop.f32.mrb[10].mxu1  ;;  %v2504_v56 = vpop.f32.mrb[20].mxu0 }
 0x85b   : > { %v2512_v57 = vadd.f32 %v2510_v53, %v1923_v51  ;;  %v2511_v60 = vmul.f32 0.125, %v2504_v56  ;;  %v4536_v61 = vpop.f32.mrb[11].mxu1  ;;  %v4541_v62 = vpop.f32.mrb[21].mxu0  ;;  %v1924_v53 = vld [vmem:[%s5715_s11 + $0x10] sm:$0xff] }
 0x85c   : > { %v2507_v63 = vpop.f32.mrb[22].mxu0 }
 0x85d   : > { %v2513_v0 = vadd.f32 %v2511_v60, %v1923_v51  ;;  %v4542_v3 = vpop.f32.mrb[23].mxu0  ;;  %v2514_v4 = vsel %vm5356_vm10, %v2512_v57, -3.4028235e+38 }
 0x85e   : > { %v2516_v5 = vsel %vm2288_vm11, %v2514_v4, -inf }
 0x85f   : > { %2517 = vmax.xlane.f32.xlu0 %v2516_v5  ;;  %v2515_v6 = vsel %vm5360_vm12, %v2513_v0, -3.4028235e+38 }
 0x860   : > { %v2519_v7 = vsel %vm2288_vm11, %v2515_v6, -inf }
 0x861   : > { %2520 = vmax.xlane.f32.xlu1 %v2519_v7 }
 0x872   : > { %2590 = vrot.lane.b32.xlu1 %v5328_v40, %s4940_s23 }
 0x8ec   : > { %v2518_v8 = vpop.xlane.xlu0 %2517 }
 0x8ed   : > { %v2522_v9 = vsub.f32 %v2514_v4, %v2518_v8 }
 0x8ee   : > { %v2521_v10 = vpop.xlane.xlu1 %2520 }
 0x8ef   : > { %v2524_v11 = vmul.f32 1.442695, %v2522_v9  ;;  %v2523_v12 = vsub.f32 %v2515_v6, %v2521_v10 }
 0x8f1   : > { %4819 = vpow2.f32 %v2524_v11  ;;  %v2526_v13 = vmul.f32 1.442695, %v2523_v12 }
 0x8f2   : > { %v2591_v14 = vpop.permute.xlu1 %2590 }
 0x8f3   : > { %4821 = vpow2.f32 %v2526_v13  ;;  %v2596_v15 = vsel %vm2316_vm7, %v2591_v14, 0 }
 0x8f4   : > { %4550 = vmatpush3.bf16.msra.mxu0 %v2596_v15 }
 0x8f5   : > { %4561 = vmatprep.subr.bf16.mxu0 %v4938_v20 }
 0x8fb   : > { %v4820_v16 = vpop.eup %4819 }
 0x8fc   : > { %v2528_v17 = vsel %vm2288_vm11, %v4820_v16, 0.0 }
 0x8fd   : > { %v4822_v1 = vpop.eup %4821  ;;  %2529 = vadd.xlane.f32.xlu0 %v2528_v17 }
 0x8fe   : > { %v2531_v40 = vsel %vm2288_vm11, %v4822_v1, 0.0 }
 0x901   : > { %2532 = vadd.xlane.f32.xlu0 %v2531_v40 }
 0x917   : > { %2541 = vrot.lane.b32.xlu0 %v5320_v35, %s4940_s23  ;;  %v2186_v35 = vpack.c.bf16 %v5311_v30, %v5311_v30  ;;  %v2178_v30 = vpack.c.bf16 %v5303_v22, %v5303_v22  ;;  %v2810_v22 = vsel %vm2316_vm7, %v5441_v38, 0 }
 0x919   : > { %v2688_v37 = vsel %vm2189_vm6, %v2186_v35, 0 }
 0x98a   : > { %v2530_v18 = vpop.xlane.xlu0 %2529 }
 0x98b   : > { %4823 = vrcp.f32 %v2530_v18 }
 0x98e   : > { %v2533_v19 = vpop.xlane.xlu0 %2532 }
 0x98f   : > { %4825 = vrcp.f32 %v2533_v19 }
 0x992   : > { %v2542_v21 = vpop.permute.xlu0 %2541 }
 0x993   : > { %v2547_v23 = vsel %vm2316_vm7, %v2542_v21, 0 }
 0x994   : > { %4544 = vmatpush3.bf16.msra.mxu1 %v2547_v23 }
 0x995   : > { %v4824_v25 = vpop.eup %4823  ;;  %4555 = vmatprep.subr.bf16.mxu1 %v4938_v20 }
 0x996   : > { %v2535_v28 = vmul.f32 %v4824_v25, %v4820_v16 }
 0x998   : > { %v2538_v31 = vpack.c.bf16 %v2535_v28, %v2535_v28 }
 0x999   : > { %v4826_v32 = vpop.eup %4825 }
 0x99a   : > { %v2537_v33 = vmul.f32 %v4826_v32, %v4822_v1  ;;  %4546 = vmatmul.mubr.msk.bf16.vlgmr.msra.gmra.mrb[12].mxu1 %vm2288_vm11, %v2538_v31 }
 0x99b   : > { %4557 = vmatprep.mubr.msk.bf16.mxu1 %vm4939_vm5, %v4938_v20 }
 0x99c   : > { %v2539_v26 = vpack.c.bf16 %v2537_v33, %v2537_v33 }
 0x99d   : > { %4556 = vmatpush3.bf16.xpose.msra.mxu1 %v2642_v34 }
 0x99e   : > { %4552 = vmatmul.mubr.msk.bf16.vlgmr.msra.gmra.mrb[24].mxu0 %vm2288_vm11, %v2539_v26  ;;  %4567 = vmatprep.subr.bf16.mxu1 %v4938_v20 }
 0x99f   : > { %4562 = vmatpush3.bf16.xpose.msra.mxu0 %v2688_v37  ;;  %4563 = vmatprep.mubr.msk.bf16.mxu0 %vm4939_vm5, %v4938_v20 }
 0x9a0   : > { %4573 = vmatprep.subr.bf16.mxu0 %v4938_v20 }
 0x9a4   : > { %4558 = vmatmul.mubr.msk.bf16.vlgmr.msra.gmra.mrb[16].mxu1 %vm2189_vm6, %v2178_v30 }
 0x9a5   : > { %4568 = vmatpush3.bf16.msra.mxu1 %v2764_v43  ;;  %4569 = vmatprep.mubr.msk.bf16.mxu1 %vm4939_vm5, %v4938_v20 }
 0x9a6   : > { %4564 = vmatmul.mubr.msk.bf16.vlgmr.msra.gmra.mrb[28].mxu0 %vm2189_vm6, %v2184_v42  ;;  %4579 = vmatprep.subr.bf16.mxu1 %v4938_v20 }
 0x9a7   : > { %4574 = vmatpush3.bf16.msra.mxu0 %v2810_v22  ;;  %4575 = vmatprep.mubr.msk.bf16.mxu0 %vm4939_vm5, %v4938_v20 }
 0x9a8   : > { %4585 = vmatprep.subr.bf16.mxu0 %v4938_v20 }
 0xa6d   : > { %v5457_v24 = vpop.f32.mrb[12].mxu1 }
 0xa6e   : > { %v4547_v36 = vpop.f32.mrb[13].mxu1 }
 0xa6f   : > { %v2586_v41 = vpop.f32.mrb[14].mxu1 }
 0xa70   : > { %v4548_v46 = vpop.f32.mrb[15].mxu1 }
 0xa71   : > { %v5459_v48 = vpop.f32.mrb[24].mxu0 }
 0xa72   : > { %v4732_v49 = vpack.i.bf16 %v5459_v48, %v5457_v24  ;;  %v4553_v50 = vpop.f32.mrb[25].mxu0 }
 0xa73   : > { %v2635_v51 = vpop.f32.mrb[26].mxu0 }
 0xa74   : > { %v4554_v52 = vpop.f32.mrb[27].mxu0  ;;  %v1925_v51 = vld [vmem:[%s5715_s11 + $0x18] sm:$0xff] }
 0xa77   : > { %v2678_v54 = vpop.f32.mrb[16].mxu1 }
 0xa78   : > { %v2730_v55 = vmul.f32 0.125, %v2678_v54  ;;  %v4559_v56 = vpop.f32.mrb[17].mxu1 }
 0xa79   : > { %v2681_v57 = vpop.f32.mrb[18].mxu1  ;;  %v2724_v60 = vpop.f32.mrb[28].mxu0 }
 0xa7a   : > { %v2732_v61 = vadd.f32 %v2730_v55, %v1924_v53  ;;  %v2731_v62 = vmul.f32 0.125, %v2724_v60  ;;  %v4560_v63 = vpop.f32.mrb[19].mxu1  ;;  %v4565_v0 = vpop.f32.mrb[29].mxu0 }
 0xa7b   : > { %v2727_v3 = vpop.f32.mrb[30].mxu0 }
 0xa7c   : > { %v2733_v4 = vadd.f32 %v2731_v62, %v1924_v53  ;;  %v4566_v5 = vpop.f32.mrb[31].mxu0  ;;  %v2734_v6 = vsel %vm5356_vm10, %v2732_v61, -3.4028235e+38 }
 0xa7d   : > { %v2736_v7 = vsel %vm2288_vm11, %v2734_v6, -inf }
 0xa7e   : > { %2737 = vmax.xlane.f32.xlu1 %v2736_v7  ;;  %v2735_v8 = vsel %vm5360_vm12, %v2733_v4, -3.4028235e+38 }
 0xa7f   : > { %v2739_v9 = vsel %vm2288_vm11, %v2735_v8, -inf }
 0xa80   : > { %2740 = vmax.xlane.f32.xlu0 %v2739_v9 }
 0xa8f   : > { %2908 = vrot.lane.b32.xlu1 %v2186_v35, %s4940_s23 }
 0xb0b   : > { %v2738_v10 = vpop.xlane.xlu1 %2737 }
 0xb0c   : > { %v2742_v11 = vsub.f32 %v2734_v6, %v2738_v10 }
 0xb0d   : > { %v2741_v12 = vpop.xlane.xlu0 %2740 }
 0xb0e   : > { %v2744_v13 = vmul.f32 1.442695, %v2742_v11  ;;  %v2743_v14 = vsub.f32 %v2735_v8, %v2741_v12 }
 0xb0f   : > { %v2909_v18 = vpop.permute.xlu1 %2908 }
 0xb10   : > { %4827 = vpow2.f32 %v2744_v13  ;;  %v2746_v15 = vmul.f32 1.442695, %v2743_v14 }
 0xb12   : > { %4829 = vpow2.f32 %v2746_v15 }
 0xb1a   : > { %v4828_v16 = vpop.eup %4827 }
 0xb1b   : > { %v2748_v17 = vsel %vm2288_vm11, %v4828_v16, 0.0 }
 0xb1c   : > { %v4830_v1 = vpop.eup %4829  ;;  %2749 = vadd.xlane.f32.xlu0 %v2748_v17  ;;  %v4757_v17 = vld [vmem:[%s5172_s1 + $0x4] ss:$8 sps:$4 sm:$0xff]  }
 0xb1d   : > { %v2751_v40 = vsel %vm2288_vm11, %v4830_v1, 0.0 }
 0xb1e   : > { %2752 = vadd.xlane.f32.xlu1 %v2751_v40 }
 0xb2f   : > { %2853 = vrot.lane.b32.xlu1 %v2178_v30, %s4940_s23 }
 0xb32   : > { %2856 = vrot.lane.b32.xlu0 %v5418_v29, %s4940_s23  ;;  %v2914_v29 = vsel %vm2189_vm6, %v2909_v18, 0 }
 0xb33   : > { %2905 = vrot.lane.b32.xlu1 %v2184_v42, %s4940_s23 }
 0xba9   : > { %v2750_v19 = vpop.xlane.xlu0 %2749 }
 0xbaa   : > { %4831 = vrcp.f32 %v2750_v19 }
 0xbab   : > { %v2753_v21 = vpop.xlane.xlu1 %2752 }
 0xbac   : > { %4833 = vrcp.f32 %v2753_v21 }
 0xbad   : > { %v2857_v31 = vpop.permute.xlu0 %2856 }
 0xbae   : > { %v2862_v33 = vsel %vm2189_vm6, %v2857_v31, 0  ;;  %v4755_v31 = vld [vmem:[%s5172_s1] ss:$8 sps:$4 sm:$0xff]  }
 0xbaf   : > { %v2854_v26 = vpop.permute.xlu1 %2853 }
 0xbb3   : > { %v2906_v37 = vpop.permute.xlu1 %2905 }
 0xbb4   : > { %v4832_v23 = vpop.eup %4831 }
 0xbb5   : > { %v2755_v25 = vmul.f32 %v4832_v23, %v4828_v16 }
 0xbb6   : > { %v4834_v28 = vpop.eup %4833 }
 0xbb7   : > { %v2757_v32 = vmul.f32 %v4834_v28, %v4830_v1  ;;  %v2758_v35 = vpack.c.bf16 %v2755_v25, %v2755_v25 }
 0xbb9   : > { %4570 = vmatmul.mubr.msk.bf16.vlgmr.msra.gmra.mrb[20].mxu1 %vm2288_vm11, %v2758_v35  ;;  %v2759_v34 = vpack.c.bf16 %v2757_v32, %v2757_v32  ;;  %v4760_v35 = vld [vmem:[%s5172_s1 + $0x14] ss:$8 sps:$4 sm:$0xff]  }
 0xbba   : > { %4580 = vmatpush3.bf16.xpose.msra.mxu1 %v2862_v33  ;;  %4581 = vmatprep.mubr.msk.bf16.mxu1 %vm4939_vm5, %v4938_v20  ;;  %v4758_v33 = vld [vmem:[%s5172_s1 + $0x10] ss:$8 sps:$4 sm:$0xff]  }
 0xbbb   : > { %4576 = vmatmul.mubr.msk.bf16.vlgmr.msra.gmra.mrb[32].mxu0 %vm2288_vm11, %v2759_v34  ;;  %4591 = vmatprep.subr.bf16.mxu1 %v4938_v20  ;;  %v3284_v34 = vld [vmem:[#allocation3] sm:$0x3] }
 0xbbc   : > { %4586 = vmatpush3.bf16.xpose.msra.mxu0 %v2914_v29  ;;  %4587 = vmatprep.mubr.msk.bf16.mxu0 %vm4939_vm5, %v4938_v20  ;;  %v3285_v29 = vpack.c.bf16 %v3284_v34, %v3284_v34 }
 0xbbd   : > { %4597 = vmatprep.subr.bf16.mxu0 %v4938_v20 }
 0xbc1   : > { %4582 = vmatmul.mubr.msk.bf16.vlgmr.msra.gmra.mrb[24].mxu1 %vm2189_vm6, %v2854_v26  ;;  %v4761_v26 = vld [vmem:[%s5175_s2 + $0x40] sm:$0xff]  }
 0xbc2   : > { %4593 = vmatprep.mubr.msk.bf16.mxu1 %vm4939_vm5, %v4938_v20 }
 0xbc3   : > { %4588 = vmatmul.mubr.msk.bf16.vlgmr.msra.gmra.mrb[36].mxu0 %vm2189_vm6, %v2906_v37  ;;  %v4762_v37 = vld [vmem:[%s5175_s2] sm:$0xff]  }
 0xbc4   : > { %4599 = vmatprep.mubr.msk.bf16.mxu0 %vm4939_vm5, %v4938_v20 }
 0xc8c   : > { %v5493_v30 = vpop.f32.mrb[20].mxu1 }
 0xc8d   : > { %v4571_v42 = vpop.f32.mrb[21].mxu1 }
 0xc8e   : > { %v2803_v43 = vpop.f32.mrb[22].mxu1  ;;  %v5495_v22 = vpop.f32.mrb[32].mxu0  ;;  %v4763_v42 = vld [vmem:[%s5175_s2 + $0x48] sm:$0xff]  }
 0xc8f   : > { %v4572_v36 = vpop.f32.mrb[23].mxu1  ;;  %v4577_v41 = vpop.f32.mrb[33].mxu0  ;;  %v4765_v43 = vld [vmem:[%s5163_s22 + $0x40] sm:$0xff]  }
 0xc90   : > { %v2849_v46 = vpop.f32.mrb[34].mxu0  ;;  %v4767_v36 = vld [vmem:[%s5163_s22] sm:$0xff]   ;;  %v4769_v41 = vld [vmem:[%s5163_s22 + $0x48] sm:$0xff]  }
 0xc91   : > { %v4578_v50 = vpop.f32.mrb[35].mxu0  ;;  %v4764_v46 = vld [vmem:[%s5175_s2 + $0x8] sm:$0xff]  }
 0xc92   : > { %v4766_v50 = vld [vmem:[%s5175_s2 + $0x50] sm:$0xff]  }
 0xc94   : > { %v2898_v52 = vpop.f32.mrb[24].mxu1 }
 0xc95   : > { %v2956_v53 = vmul.f32 0.125, %v2898_v52  ;;  %v4583_v54 = vpop.f32.mrb[25].mxu1  ;;  %v4773_v52 = vld [vmem:[%s5163_s22 + $0x50] sm:$0xff]  }
 0xc96   : > { %v2901_v55 = vpop.f32.mrb[26].mxu1  ;;  %v2950_v56 = vpop.f32.mrb[36].mxu0  ;;  %v4770_v54 = vld [vmem:[%s5175_s2 + $0x58] sm:$0xff]  }
 0xc97   : > { %v2958_v57 = vadd.f32 %v2956_v53, %v1925_v51  ;;  %v2957_v60 = vmul.f32 0.125, %v2950_v56  ;;  %v4584_v61 = vpop.f32.mrb[27].mxu1  ;;  %v4589_v62 = vpop.f32.mrb[37].mxu0  ;;  %v4768_v53 = vld [vmem:[%s5175_s2 + $0x10] sm:$0xff]   ;;  %v4777_v56 = vld [vmem:[%s5163_s22 + $0x58] sm:$0xff]  }
 0xc98   : > { %v2953_v63 = vpop.f32.mrb[38].mxu0  ;;  %v4775_v55 = vld [vmem:[%s5163_s22 + $0x10] sm:$0xff]   ;;  %v4779_v61 = vld [vmem:[%s5163_s22 + $0x18] sm:$0xff]   ;;  %v4781_v62 = vld [vmem:[%s5163_s22 + $0x60] sm:$0xff]  }
 0xc99   : > { %v2959_v0 = vadd.f32 %v2957_v60, %v1925_v51  ;;  %v4590_v3 = vpop.f32.mrb[39].mxu0  ;;  %v2960_v4 = vsel %vm5356_vm10, %v2958_v57, -3.4028235e+38  ;;  %v4771_v51 = vld [vmem:[%s5163_s22 + $0x8] sm:$0xff]   ;;  %v4772_v57 = vld [vmem:[%s5175_s2 + $0x18] sm:$0xff]   ;;  %v4774_v60 = vld [vmem:[%s5175_s2 + $0x60] sm:$0xff]  }
 0xc9a   : > { %v2962_v5 = vsel %vm2288_vm11, %v2960_v4, -inf  ;;  %v4776_v63 = vld [vmem:[%s5175_s2 + $0x20] sm:$0xff]  }
 0xc9b   : > { %2963 = vmax.xlane.f32.xlu0 %v2962_v5  ;;  %v2961_v6 = vsel %vm5360_vm12, %v2959_v0, -3.4028235e+38  ;;  %v4778_v0 = vld [vmem:[%s5175_s2 + $0x68] sm:$0xff]   ;;  %v4783_v3 = vld [vmem:[%s5163_s22 + $0x20] sm:$0xff]  }
 0xc9c   : > { %v2965_v7 = vsel %vm2288_vm11, %v2961_v6, -inf  ;;  %v4780_v5 = vld [vmem:[%s5175_s2 + $0x28] sm:$0xff]  }
 0xc9d   : > { %2966 = vmax.xlane.f32.xlu1 %v2965_v7  ;;  %v4787_v7 = vld [vmem:[%s5163_s22 + $0x28] sm:$0xff]  }
 0xcae   : > { %3036 = vrot.lane.b32.xlu1 %v5441_v38, %s4940_s23 }
 0xd28   : > { %v2964_v8 = vpop.xlane.xlu0 %2963 }
 0xd29   : > { %v2968_v9 = vsub.f32 %v2960_v4, %v2964_v8  ;;  %v4785_v4 = vld [vmem:[%s5163_s22 + $0x68] sm:$0xff]   ;;  %v4784_v8 = vld [vmem:[%s5175_s2 + $0x30] sm:$0xff]  }
 0xd2a   : > { %v2967_v10 = vpop.xlane.xlu1 %2966 }
 0xd2b   : > { %v2970_v11 = vmul.f32 1.442695, %v2968_v9  ;;  %v2969_v12 = vsub.f32 %v2961_v6, %v2967_v10  ;;  %v4782_v6 = vld [vmem:[%s5175_s2 + $0x70] sm:$0xff]   ;;  %v4786_v9 = vld [vmem:[%s5175_s2 + $0x78] sm:$0xff]  }
 0xd2c   : > { %v4788_v10 = vld [vmem:[%s5175_s2 + $0x38] sm:$0xff]  }
 0xd2d   : > { %4835 = vpow2.f32 %v2970_v11  ;;  %v2972_v59 = vmul.f32 1.442695, %v2969_v12  ;;  %v4789_v11 = vld [vmem:[%s5163_s22 + $0x70] sm:$0xff]  }
 0xd2e   : > { %v3037_v13 = vpop.permute.xlu1 %3036  ;;  %v4790_v12 = vld [vmem:[%s5163_s22 + $0x30] sm:$0xff]  }
 0xd2f   : > { %4837 = vpow2.f32 %v2972_v59  ;;  %v3042_v14 = vsel %vm2316_vm7, %v3037_v13, 0  ;;  %v4791_v59 = vld [vmem:[%s5163_s22 + $0x78] sm:$0xff]  }
 0xd30   : > { %4598 = vmatpush3.bf16.msra.mxu0 %v3042_v14  ;;  %v4792_v13 = vld [vmem:[%s5163_s22 + $0x38] sm:$0xff]   ;;  %s5720_s22 = scalar_lea.vmem %s5090_s29, %s5154_s0 }
 0xd31   : > { %3313 = vmatprep.subr.bf16.mxu0 %v4757_v17 }
 0xd37   : > { %v4836_v2 = vpop.eup %4835 }
 0xd38   : > { %v2974_v15 = vsel %vm2288_vm11, %v4836_v2, 0.0 }
 0xd39   : > { %v4838_v16 = vpop.eup %4837  ;;  %2975 = vadd.xlane.f32.xlu0 %v2974_v15 }
 0xd3a   : > { %v2977_v38 = vsel %vm2288_vm11, %v4838_v16, 0.0 }
 0xd3d   : > { %2978 = vadd.xlane.f32.xlu0 %v2977_v38 }
 0xd53   : > { %2987 = vrot.lane.b32.xlu0 %v5434_v27, %s4940_s23 }
 0xdc6   : > { %v2976_v1 = vpop.xlane.xlu0 %2975 }
 0xdc7   : > { %4839 = vrcp.f32 %v2976_v1 }
 0xdca   : > { %v2979_v40 = vpop.xlane.xlu0 %2978 }
 0xdcb   : > { %4841 = vrcp.f32 %v2979_v40 }
 0xdce   : > { %v2988_v18 = vpop.permute.xlu0 %2987 }
 0xdcf   : > { %v2993_v19 = vsel %vm2316_vm7, %v2988_v18, 0 }
 0xdd0   : > { %4592 = vmatpush3.bf16.msra.mxu1 %v2993_v19 }
 0xdd1   : > { %v4840_v21 = vpop.eup %4839  ;;  %4381 = vmatprep.subr.bf16.mxu1 %v4765_v43 }
 0xdd2   : > { %v2981_v23 = vmul.f32 %v4840_v21, %v4836_v2 }
 0xdd4   : > { %v2984_v25 = vpack.c.bf16 %v2981_v23, %v2981_v23 }
 0xdd5   : > { %v4842_v28 = vpop.eup %4841 }
 0xdd6   : > { %v2983_v27 = vmul.f32 %v4842_v28, %v4838_v16  ;;  %4594 = vmatmul.mubr.msk.bf16.vlgmr.msra.gmra.mrb[28].mxu1 %vm2288_vm11, %v2984_v25 }
 0xdd7   : > { %4382 = vmatpush3.bf16.msra.mxu1 %v4767_v36 }
 0xdd8   : > { %v2985_v32 = vpack.c.bf16 %v2983_v27, %v2983_v27  ;;  %4383 = vmatprep.subr.bf16.mxu1 %v4769_v41 }
 0xdda   : > { %4600 = vmatmul.mubr.msk.bf16.vlgmr.msra.gmra.mrb[40].mxu0 %vm2288_vm11, %v2985_v32 }
 0xddb   : > { %3314 = vmatpush1.bf16.msra.mxu0 %v4755_v31  ;;  %3345 = vmatprep.mubr.bf16.mxu0 %v4937_v58 }
 0xddc   : > { %3315 = vmatprep.subr.bf16.mxu0 %v4760_v35  ;;  %4384 = vmatpush3.bf16.msra.mxu1 %v4771_v51 }
 0xddd   : > { %4385 = vmatprep.subr.bf16.mxu1 %v4773_v52  ;;  %v4272_v52 = vld [vmem:[%s1304_s7] ss:$0 sm:$0xff]  ;;  %s5725_s7 = sld [smem:[#allocation26_spill]] (!%p4305_p5) }
 0xddf   : > { %3316 = vmatpush1.bf16.msra.mxu0 %v4758_v33 }
 0xde0   : > { %4403 = vmatprep.subr.bf16.mxu0 %v4761_v26  ;;  %4386 = vmatpush3.bf16.msra.mxu1 %v4775_v55 }
 0xde1   : > { %4387 = vmatprep.subr.bf16.mxu1 %v4777_v56  ;;  %v4250_v56 = vld [vmem:[%s5720_s22] ss:$0 sm:$0xff] }
 0xde2   : > { %4271 = vmatmul.mubr.msk.bf16.vlgmr.msra.gmra.mrb[44].mxu0 %vm1928_vm4, %v3285_v29 }
 0xde3   : > { %4404 = vmatpush3.bf16.msra.mxu0 %v4762_v37 }
 0xde4   : > { %4405 = vmatprep.subr.bf16.mxu0 %v4763_v42  ;;  %4388 = vmatpush3.bf16.msra.mxu1 %v4779_v61 }
 0xde5   : > { %4389 = vmatprep.subr.bf16.mxu1 %v4781_v62 }
 0xde7   : > { %4406 = vmatpush3.bf16.msra.mxu0 %v4764_v46  ;;  %v4941_v46 = vmov 1966171168  }
 0xde8   : > { %4407 = vmatprep.subr.bf16.mxu0 %v4766_v50  ;;  %4390 = vmatpush3.bf16.msra.mxu1 %v4783_v3  ;;  %v3533_v50 = vunpack.c.l.s4 %v4941_v46  ;;  %v4800_v46 = vld [vmem:[%s5192_s3 + $0x8] sm:$0xff]  }
 0xde9   : > { %4391 = vmatprep.subr.bf16.mxu1 %v4785_v4  ;;  %v4851_v4 = vld [vmem:[#allocation2] sm:$0xff] }
 0xdea   : > { %v3534_v51 = vunpack.c.0.s8 %v3533_v50  ;;  %v4801_v50 = vld [vmem:[%s5192_s3 + $0x10] sm:$0xff]  }
 0xdeb   : > { %4408 = vmatpush3.bf16.msra.mxu0 %v4768_v53 }
 0xdec   : > { %4409 = vmatprep.subr.bf16.mxu0 %v4770_v54  ;;  %4392 = vmatpush3.bf16.msra.mxu1 %v4787_v7  ;;  %v3537_v53 = vsub.s32 %v3534_v51, %v5345_v45  ;;  %v4802_v51 = vld [vmem:[%s5192_s3 + $0x18] sm:$0xff]  }
 0xded   : > { %4393 = vmatprep.subr.bf16.mxu1 %v4789_v11 }
 0xdef   : > { %4410 = vmatpush3.bf16.msra.mxu0 %v4772_v57 }
 0xdf0   : > { %4411 = vmatprep.subr.bf16.mxu0 %v4774_v60  ;;  %4394 = vmatpush3.bf16.msra.mxu1 %v4790_v12 }
 0xdf1   : > { %4395 = vmatprep.subr.bf16.mxu1 %v4791_v59 }
 0xdf3   : > { %4412 = vmatpush3.bf16.msra.mxu0 %v4776_v63 }
 0xdf4   : > { %4413 = vmatprep.subr.bf16.mxu0 %v4778_v0  ;;  %4396 = vmatpush3.bf16.msra.mxu1 %v4792_v13 }
 0xdf7   : > { %4414 = vmatpush3.bf16.msra.mxu0 %v4780_v5 }
 0xdf8   : > { %4415 = vmatprep.subr.bf16.mxu0 %v4782_v6 }
 0xdfb   : > { %4416 = vmatpush3.bf16.msra.mxu0 %v4784_v8  ;;  %v4852_v8 = vld [vmem:[#allocation2 + $0x8] sm:$0xff] }
 0xdfc   : > { %4417 = vmatprep.subr.bf16.mxu0 %v4786_v9 }
 0xdff   : > { %4418 = vmatpush3.bf16.msra.mxu0 %v4788_v10 }
 0xea9   : > { %v3029_v14 = vpop.f32.mrb[28].mxu1 }
 0xeaa   : > { %v4595_v2 = vpop.f32.mrb[29].mxu1 }
 0xeab   : > { %v3032_v15 = vpop.f32.mrb[30].mxu1 }
 0xeac   : > { %v4596_v16 = vpop.f32.mrb[31].mxu1 }
 0xead   : > { %v3078_v38 = vpop.f32.mrb[40].mxu0 }
 0xeae   : > { %v4727_v17 = vpack.i.bf16 %v3078_v38, %v3029_v14  ;;  %v4601_v1 = vpop.f32.mrb[41].mxu0 }
 0xeaf   : > { %v3081_v40 = vpop.f32.mrb[42].mxu0 }
 0xeb0   : > { %4728 = vrot.lane.b32.xlu1 %v4727_v17, %s4940_s23  ;;  %v4602_v18 = vpop.f32.mrb[43].mxu0 }
 0xeb4   : > { %4733 = vrot.lane.b32.xlu1 %v4732_v49, %s4940_s23 }
 0xeb5   : > { %v3347_v19 = vpop.f32.mrb[44].mxu0 }
 0xeb6   : > { %v3354_v21 = vpack.c.bf16 %v3347_v19, %v3347_v19  ;;  %v3349_v23 = vpop.f32.mrb[45].mxu0 }
 0xeb7   : > { %v3355_v25 = vpack.c.bf16 %v3349_v23, %v3349_v23  ;;  %v3351_v28 = vpop.f32.mrb[46].mxu0  ;;  %v4793_v23 = vld [vmem:[%s5184_s25] ss:$8 sps:$4 sm:$0xff]  }
 0xeb8   : > { %v3352_v27 = vpop.f32.mrb[47].mxu0  ;;  %v4798_v28 = vld [vmem:[%s5184_s25 + $0x14] ss:$8 sps:$4 sm:$0xff]  }
 0xeb9   : > { %3523 = vmatprep.mubr.bf16.mxu0 %v3355_v25  ;;  %v4796_v25 = vld [vmem:[%s5184_s25 + $0x10] ss:$8 sps:$4 sm:$0xff]  }
 0xeba   : > { %3524 = vmatmul.mubr.bf16.vlgmr.msra.gmra.mrb[48].mxu0 %v3354_v21  ;;  %v4795_v21 = vld [vmem:[%s5184_s25 + $0x4] ss:$8 sps:$4 sm:$0xff]   ;;  %s5721_s25 = scalar_lea.vmem %s5115_s4, %s5154_s0 }
 0xebb   : > { %3650 = vmatprep.subr.bf16.mxu1 %v4795_v21 }
 0xf22   : > { %v4729_v31 = vpop.permute.xlu1 %4728 }
 0xf23   : > { %v4731_v32 = vunpack.i.h.bf16 %v4729_v31  ;;  %v4730_v35 = vunpack.i.l.bf16 %v4729_v31 }
 0xf25   : > { %v3102_v33 = vsel %vm2189_vm6, %v5493_v30, %v4730_v35  ;;  %v3103_v34 = vsel %vm2189_vm6, %v5495_v22, %v4731_v32 }
 0xf26   : > { %v4734_v29 = vpop.permute.xlu1 %4733  ;;  %v3105_v24 = vpack.c.bf16 %v3103_v34, %v3102_v33 }
 0xf27   : > { %v4736_v48 = vunpack.i.h.bf16 %v4734_v29  ;;  %v4735_v49 = vunpack.i.l.bf16 %v4734_v29 }
 0xf28   : > { %3273 = vmatprep.mubr.bf16.mxu1 %v3105_v24 }
 0xf29   : > { %v3101_v26 = vsel %vm2189_vm6, %v5397_v44, %v4736_v48  ;;  %v3100_v37 = vsel %vm2189_vm6, %v5395_v39, %v4735_v49  ;;  %v4289_v48 = vld [vmem:[%s1307_s5] ss:$0 sm:$0xff]  ;;  %s5722_s5 = scalar_lea.vmem %s5135_s19, %s5154_s0  ;;  %s5726_s0 = sld [smem:[#allocation28_spill]] (!%p4305_p5) }
 0xf2a   : > { %v3104_v42 = vpack.c.bf16 %v3101_v26, %v3100_v37 }
 0xf2c   : > { %3274 = vmatmul.mubr.bf16.vlgmr.msra.gmra.mrb[32].mxu1 %v3104_v42  ;;  %v4290_v42 = vld [vmem:[%s5721_s25] ss:$0 sm:$0xff] }
 0xf2d   : > { %3682 = vmatprep.mubr.bf16.mxu1 %v4937_v58  ;;  %3651 = vmatpush1.bf16.msra.mxu1 %v4793_v23  ;;  %v4296_v23 = vld [vmem:[%s5722_s5] ss:$0 sm:$0xff] }
 0xf2e   : > { %3652 = vmatprep.subr.bf16.mxu1 %v4798_v28 }
 0xf31   : > { %3653 = vmatpush1.bf16.msra.mxu1 %v4796_v25 }
 0xf32   : > { %4603 = vmatprep.subr.bf16.mxu1 %v4938_v20 }
 0xf8d   : > { %v4419_v30 = vpop.f32.mrb[48].mxu0 }
 0xf8e   : > { %v4420_v22 = vpop.f32.mrb[49].mxu0 }
 0xf8f   : > { %v4421_v43 = vadd.f32 %v4420_v22, %v4419_v30  ;;  %v4422_v36 = vpop.f32.mrb[50].mxu0 }
 0xf90   : > { %v4423_v41 = vpop.f32.mrb[51].mxu0 }
 0xf91   : > { %v3526_v44 = vadd.f32 %v4421_v43, %v4272_v52  ;;  %v4799_v41 = vld [vmem:[%s5192_s3] sm:$0xff]  }
 0xf92   : > { %v4803_v52 = vld [vmem:[%s5192_s3 + $0x20] sm:$0xff]  }
 0xf93   : > { %v3538_v39 = vrot.slane %v3526_v44, %v3537_v53  ;;  %v4804_v44 = vld [vmem:[%s5192_s3 + $0x28] sm:$0xff]  }
 0xf95   : > { %v3539_v54 = vcombine.high %v3538_v39, %v3538_v39  ;;  %v3546_v58 = vrot.slane %v3538_v39, %v3537_v53  ;;  %v4806_v39 = vld [vmem:[%s5192_s3 + $0x38] sm:$0xff]  }
 0xf97   : > { %v3553_v63 = vrot.slane %v3539_v54, %v3537_v53  ;;  %v3557_v7 = vrot.slane %v3546_v58, %v5349_v47  ;;  %v4805_v53 = vld [vmem:[%s5192_s3 + $0x30] sm:$0xff]   ;;  %v3623_v54 = vsub.s32 1, %v5345_v45  ;;  %s5724_s3 = sld [smem:[#allocation25_spill]] (!%p4305_p5) }
 0xf99   : > { %v3561_v11 = vrot.slane %v3553_v63, %v5349_v47 }
 0xfff   : > { %v4397_v55 = vpop.f32.mrb[32].mxu1 }
0x1000   : > { %v4398_v57 = vpop.f32.mrb[33].mxu1 }
0x1001   : > { %v4399_v60 = vadd.f32 %v4398_v57, %v4397_v55  ;;  %v4400_v61 = vpop.f32.mrb[34].mxu1  ;;  %v3615_v55 = vld [vmem:[%s5189_s9] sm:$0x3]  ;;  %s5723_s9 = sld [smem:[#allocation27_spill]] (!%p4305_p5) }
0x1002   : > { %v4401_v62 = vpop.f32.mrb[35].mxu1  ;;  %v3620_v45 = vrot.slane %v3615_v55, %v5349_v47 }
0x1003   : > { %v3276_v0 = vadd.f32 %v4399_v60, %v4250_v56  ;;  %v4402_v3 = vadd.f32 %v4401_v62, %v4400_v61 }
0x1005   : > { %v3282_v5 = vadd.f32 %v4851_v4, %v3276_v0  ;;  %v3279_v6 = vadd.f32 %v4402_v3, %v4250_v56  ;;  %v3624_v56 = vrot.slane %v3615_v55, %v3623_v54  ;;  %v4306_v55 = vld [vmem:[%s5724_s3] ss:$0 sm:$0xff] (!%p4305_p5) }
0x1007   : > { %v3283_v9 = vadd.f32 %v4852_v8, %v3279_v6  ;;  %v5574_v10 = vadd.f32 %v3557_v7, %v3282_v5 }
0x1009   : > { %v3568_v12 = vsel %vm1928_vm4, %v5574_v10, 0.0  ;;  %v5579_v59 = vadd.f32 %v3561_v11, %v3283_v9 }
0x100a   : > { %3569 = vadd.xlane.f32.xlu0 %v3568_v12 }
0x100b   : > { %v3571_v13 = vsel %vm1928_vm4, %v5579_v59, 0.0 }
0x100c   : > { %3572 = vadd.xlane.f32.xlu1 %v3571_v13 }
0x1097   : > { %v3570_v14 = vpop.xlane.xlu0 %3569 }
0x1098   : > { %v3574_v2 = vmul.f32 0.03125, %v3570_v14 }
0x1099   : > { %v3573_v15 = vpop.xlane.xlu1 %3572 }
0x109a   : > { %v3576_v16 = vsub.f32 %v5574_v10, %v3574_v2  ;;  %v3575_v38 = vmul.f32 0.03125, %v3573_v15 }
0x109c   : > { %v3577_v17 = vsub.f32 %v5579_v59, %v3575_v38  ;;  %v3578_v1 = vmul.f32 %v3576_v16, %v3576_v16 }
0x109e   : > { %v3580_v40 = vsel %vm1928_vm4, %v3578_v1, 0.0  ;;  %v3579_v18 = vmul.f32 %v3577_v17, %v3577_v17 }
0x109f   : > { %3581 = vadd.xlane.f32.xlu0 %v3580_v40 }
0x10a0   : > { %v3583_v19 = vsel %vm1928_vm4, %v3579_v18, 0.0 }
0x10a3   : > { %3584 = vadd.xlane.f32.xlu0 %v3583_v19 }
0x112c   : > { %v3582_v27 = vpop.xlane.xlu0 %3581 }
0x112d   : > { %v3586_v31 = vmul.f32 0.03125, %v3582_v27 }
0x112f   : > { %v3588_v32 = vadd.f32 1e-05, %v3586_v31 }
0x1130   : > { %v3585_v35 = vpop.xlane.xlu0 %3584 }
0x1131   : > { %4843 = vrsqrt.f32 %v3588_v32  ;;  %v3587_v33 = vmul.f32 0.03125, %v3585_v35 }
0x1133   : > { %v3589_v34 = vadd.f32 1e-05, %v3587_v33 }
0x1135   : > { %4845 = vrsqrt.f32 %v3589_v34 }
0x113b   : > { %v4844_v29 = vpop.eup %4843 }
0x113c   : > { %v3592_v24 = vmul.f32 %v4844_v29, %v3576_v16 }
0x113e   : > { %v3600_v26 = vmul.f32 %v4289_v48, %v3592_v24 }
0x113f   : > { %v4846_v49 = vpop.eup %4845 }
0x1140   : > { %v3593_v37 = vmul.f32 %v4846_v49, %v3577_v17  ;;  %v3608_v22 = vadd.f32 %v4290_v42, %v3600_v26 }
0x1142   : > { %v3601_v30 = vmul.f32 %v4289_v48, %v3593_v37 }
0x1144   : > { %v3609_v43 = vadd.f32 %v4290_v42, %v3601_v30 }
0x1146   : > { %v3610_v36 = vpack.c.bf16 %v3609_v43, %v3608_v22  ;;  %v4853_v43 = vld [vmem:[%s5723_s9] sm:$0xff] (!%p4305_p5)  }
0x1148   : > { %4295 = vmatmul.mubr.msk.bf16.vlgmr.msra.gmra.mrb[36].mxu1 %vm1928_vm4, %v3610_v36  ;;  %v4942_v36 = vmov (!%p4305_p5), 0.0  }
0x1149   : > { %4619 = vmatprep.mubr.msk.bf16.mxu1 %vm4939_vm5, %v4938_v20  ;;  %4604 = vmatpush3.bf16.msra.mxu1 %v4799_v41  ;;  %v4854_v41 = vld [vmem:[%s5723_s9 + $0x8] sm:$0xff] (!%p4305_p5)  }
0x114a   : > { %4605 = vmatprep.subr.bf16.mxu1 %v4938_v20  ;;  %4623 = vmatprep.subr.bf16.mxu0 (!%p4305_p5), %v4942_v36 }
0x114b   : > { %4627 = vmatprep.mubr.msk.bf16.mxu0 (!%p4305_p5), %vm4943_vm13, %v4942_v36  ;;  %4624 = vmatpush3.bf16.msra.mxu0 (!%p4305_p5), %v4853_v43 }
0x114c   : > { %4625 = vmatprep.subr.bf16.mxu0 (!%p4305_p5), %v4942_v36 }
0x114d   : > { %4606 = vmatpush3.bf16.msra.mxu1 %v4800_v46 }
0x114e   : > { %4607 = vmatprep.subr.bf16.mxu1 %v4938_v20 }
0x114f   : > { %4626 = vmatpush3.bf16.msra.mxu0 (!%p4305_p5), %v4854_v41 }
0x1151   : > { %4608 = vmatpush3.bf16.msra.mxu1 %v4801_v50 }
0x1152   : > { %4609 = vmatprep.subr.bf16.mxu1 %v4938_v20 }
0x1155   : > { %4610 = vmatpush3.bf16.msra.mxu1 %v4802_v51 }
0x1156   : > { %4611 = vmatprep.subr.bf16.mxu1 %v4938_v20 }
0x1159   : > { %4612 = vmatpush3.bf16.msra.mxu1 %v4803_v52 }
0x115a   : > { %4613 = vmatprep.subr.bf16.mxu1 %v4938_v20 }
0x115d   : > { %4614 = vmatpush3.bf16.msra.mxu1 %v4804_v44 }
0x115e   : > { %4615 = vmatprep.subr.bf16.mxu1 %v4938_v20 }
0x1161   : > { %4616 = vmatpush3.bf16.msra.mxu1 %v4805_v53 }
0x1162   : > { %4617 = vmatprep.subr.bf16.mxu1 %v4938_v20 }
0x1165   : > { %4618 = vmatpush3.bf16.msra.mxu1 %v4806_v39 }
0x121b   : > { %v3684_v57 = vpop.f32.mrb[36].mxu1 }
0x121c   : > { %v3686_v58 = vpop.f32.mrb[37].mxu1  ;;  %v3685_v15 = vadd.f32 %v3684_v57, %v3620_v45 }
0x121d   : > { %v3687_v60 = vadd.f32 %v3686_v58, %v3624_v56  ;;  %v3688_v61 = vpop.f32.mrb[38].mxu1 }
0x121e   : > { %v3690_v62 = vpop.f32.mrb[39].mxu1  ;;  %v3689_v1 = vadd.f32 %v3688_v61, %v3620_v45 }
0x121f   : > { %v3695_v63 = vmul.f32 0.044715, %v3687_v60  ;;  %v3691_v0 = vadd.f32 %v3690_v62, %v3624_v56  ;;  %v3693_v13 = vmul.f32 0.5, %v3687_v60 }
0x1221   : > { %v3697_v3 = vmul.f32 %v3695_v63, %v3687_v60  ;;  %v3696_v4 = vmul.f32 0.044715, %v3691_v0  ;;  %v3694_v16 = vmul.f32 0.5, %v3691_v0 }
0x1223   : > { %v3699_v5 = vmul.f32 %v3697_v3, %v3687_v60  ;;  %v3698_v6 = vmul.f32 %v3696_v4, %v3691_v0  ;;  %v4308_v3 = vld [vmem:[%s5726_s0] ss:$0 sm:$0xff] (!%p4305_p5) }
0x1225   : > { %v3701_v7 = vadd.f32 %v3699_v5, %v3687_v60  ;;  %v3700_v8 = vmul.f32 %v3698_v6, %v3691_v0  ;;  %v4307_v60 = vld [vmem:[%s5725_s7] ss:$0 sm:$0xff] (!%p4305_p5) }
0x1227   : > { %v3703_v9 = vmul.f32 0.7978846, %v3701_v7  ;;  %v3702_v20 = vadd.f32 %v3700_v8, %v3691_v0 }
0x1229   : > { %4847 = vtanh.f32 %v3703_v9  ;;  %v3704_v11 = vmul.f32 0.7978846, %v3702_v20 }
0x122b   : > { %4849 = vtanh.f32 %v3704_v11 }
0x1233   : > { %v4848_v12 = vpop.eup %4847 }
0x1234   : > { %v3707_v14 = vadd.f32 1.0, %v4848_v12 }
0x1235   : > { %v4850_v2 = vpop.eup %4849 }
0x1236   : > { %v3708_v38 = vadd.f32 1.0, %v4850_v2  ;;  %v3709_v17 = vmul.f32 %v3707_v14, %v3693_v13 }
0x1238   : > { %v3710_v40 = vmul.f32 %v3708_v38, %v3694_v16  ;;  %v3711_v18 = vmul.f32 %v3709_v17, %v3685_v15 }
0x123a   : > { %v3712_v19 = vmul.f32 %v3710_v40, %v3689_v1 }
0x123c   : > { %v3713_v21 = vpack.c.bf16 %v3712_v19, %v3711_v18 }
0x123e   : > { %4620 = vmatmul.mubr.bf16.vlgmr.msra.gmra.mrb[40].mxu1 %v3713_v21 }
0x1311   : > { %v3819_v25 = vpop.f32.mrb[40].mxu1 }
0x1312   : > { %v3820_v28 = vadd.f32 %v4296_v23, %v3819_v25  ;;  %v4621_v27 = vpop.f32.mrb[41].mxu1  ;;  %3833 = sbr.rel (%p4305_p5) target bundleno = 5422 (0x152e), region = 176 }
0x1313   : > { %v3822_v47 = vpop.f32.mrb[42].mxu1 }
0x1314   : > { %v3826_v31 = vadd.f32 %v3820_v28, %v5574_v10  ;;  %v3823_v32 = vadd.f32 %v4296_v23, %v3822_v47  ;;  %v4622_v35 = vpop.f32.mrb[43].mxu1 }
0x1316   : > { %3828 = vst.msk [vmem:[#allocation2] sm:$0xff] %vm1928_vm4, %v3826_v31  ;;  %v3827_v33 = vadd.f32 %v3823_v32, %v5579_v59  ;;  %v3836_v34 = vsel (!%p4305_p5), %vm1928_vm4, %v3826_v31, 0.0 }
0x1317   : > { %3837 = vadd.xlane.f32.xlu0 (!%p4305_p5), %v3836_v34 }
0x1318   : > { %3829 = vst.msk [vmem:[#allocation2 + $0x8] sm:$0xff] %vm1928_vm4, %v3827_v33  ;;  %v3839_v29 = vsel (!%p4305_p5), %vm1928_vm4, %v3827_v33, 0.0 }
0x131b   : > { %3840 = vadd.xlane.f32.xlu0 %v3839_v29 }
0x13a4   : > { %v3838_v24 = vpop.xlane.xlu0 %3837 }
0x13a5   : > { %v3842_v10 = vmul.f32 0.03125, %v3838_v24 }
0x13a7   : > { %v3844_v48 = vsub.f32 %v3826_v31, %v3842_v10 }
0x13a8   : > { %v3841_v49 = vpop.xlane.xlu0 %3840 }
0x13a9   : > { %v3843_v26 = vmul.f32 0.03125, %v3841_v49  ;;  %v3846_v37 = vmul.f32 %v3844_v48, %v3844_v48 }
0x13ab   : > { %v3845_v59 = vsub.f32 %v3827_v33, %v3843_v26  ;;  %v3848_v42 = vsel %vm1928_vm4, %v3846_v37, 0.0 }
0x13ac   : > { %3849 = vadd.xlane.f32.xlu1 %v3848_v42 }
0x13ad   : > { %v3847_v30 = vmul.f32 %v3845_v59, %v3845_v59 }
0x13af   : > { %v3851_v22 = vsel %vm1928_vm4, %v3847_v30, 0.0 }
0x13b0   : > { %3852 = vadd.xlane.f32.xlu1 %v3851_v22 }
0x1439   : > { %v3850_v46 = vpop.xlane.xlu1 %3849 }
0x143a   : > { %v3854_v50 = vmul.f32 0.03125, %v3850_v46 }
0x143c   : > { %v3856_v51 = vadd.f32 1e-05, %v3854_v50 }
0x143d   : > { %v3853_v52 = vpop.xlane.xlu1 %3852 }
0x143e   : > { %4855 = vrsqrt.f32 %v3856_v51  ;;  %v3855_v44 = vmul.f32 0.03125, %v3853_v52 }
0x1440   : > { %v3857_v53 = vadd.f32 1e-05, %v3855_v44 }
0x1442   : > { %4857 = vrsqrt.f32 %v3857_v53 }
0x1448   : > { %v4856_v39 = vpop.eup %4855 }
0x1449   : > { %v3860_v54 = vmul.f32 %v4856_v39, %v3844_v48 }
0x144b   : > { %v3868_v58 = vmul.f32 %v4306_v55, %v3860_v54 }
0x144c   : > { %v4858_v56 = vpop.eup %4857 }
0x144d   : > { %v3861_v57 = vmul.f32 %v4858_v56, %v3845_v59  ;;  %v3876_v62 = vadd.f32 %v4307_v60, %v3868_v58 }
0x144f   : > { %v3869_v61 = vmul.f32 %v4306_v55, %v3861_v57 }
0x1451   : > { %v3877_v63 = vadd.f32 %v4307_v60, %v3869_v61 }
0x1453   : > { %v3878_v0 = vpack.c.bf16 %v3877_v63, %v3876_v62 }
0x1455   : > { %4628 = vmatmul.mubr.msk.bf16.vlgmr.msra.gmra.mrb[0].mxu0 %vm1928_vm4, %v3878_v0 }
0x1528   : > { %v3939_v4 = vpop.f32.mrb[0].mxu0 }
0x1529   : > { %v3940_v5 = vadd.f32 %v4308_v3, %v3939_v4  ;;  %v4629_v6 = vpop.f32.mrb[1].mxu0 }
0x152a   : > { %v3942_v7 = vpop.f32.mrb[2].mxu0 }
0x152b   : > { %3947 = vst.msk [vmem:[#allocation4] sm:$0xff] %vm3946_vm14, %v3940_v5  ;;  %v3943_v8 = vadd.f32 %v4308_v3, %v3942_v7  ;;  %v4630_v9 = vpop.f32.mrb[3].mxu0 }
0x152d   : > { %3948 = vst.msk [vmem:[#allocation4 + $0x8] sm:$0xff] %vm3946_vm14, %v3943_v8 }
0x152e PF: > { %p4642_p6 = scmp.eq.s32.totalorder %s5148_s10, 1  ;;  %s4944_s1 = smov [#allocation4]  }
0x152f   : > { %s3955_s2 = sshll.u32 %s4944_s1, 4  ;;  %s3956_s2 = int_to_ptr.vmem [resolvable:$true] %s3955_s2 }
0x1530   : > { %s4859_s28 = scalar_lea.vmem %s3956_s2, 256  ;;  %p4866_p10 = scmp.lt.s32.totalorder %s3956_s2, %s3956_s2 }
0x1531   : > { %p4860_p7 = scmp.ne.s32.totalorder %s3956_s2, %s4859_s28  ;;  %p4867_p11 = scmp.lt.s32.totalorder %s4859_s28, %s4859_s28 }
0x1533   : > { %p4861_p8 = pnand %p4860_p7, %p4642_p6  ;;  %p4868_p12 = por %p4867_p11, %p4866_p10 }
0x1535   : > { %p4862_p9 = pneg %p4861_p8 }
0x1537   : > { %p4869_p13 = pnand %p4868_p12, %p4862_p9 }
0x1539   : > { %4872 = shalt.err (!%p4869_p13)
}
0x153a   : > { %s5727_s16 = sld [smem:[#allocation32_spill]] }
0x1540   : > { %s4873_s18 = scalar_lea.hbm %s5727_s16, 256 }
0x1541   : > { %p4874_p0 = scmp.ne.s32.totalorder %s5727_s16, %s4873_s18  ;;  %p4879_p3 = scmp.lt.u32.totalorder %s4873_s18, %s5727_s16 }
0x1543   : > { %p4875_p1 = pnand %p4874_p0, %p4642_p6 }
0x1545   : > { %p4876_p2 = pneg %p4875_p1 }
0x1547   : > { %p4881_p4 = pnand %p4879_p3, %p4876_p2 }
0x1549   : > { %4884 = shalt.err (!%p4881_p4)
}
0x154a   : > { %s4945_s23 = smov 128   ;;  %s4946_s22 = smov 8  }
0x154b   : > { %4639 = dma.vmem_to_hbm [thread:$0]  (%p4642_p6), %s3956_s2, 256, %s5727_s16, [#allocation5], %s4945_s23, %s4945_s23, %s4946_s22  }
0x154c   : > { %4890 = dma.done.wait (%p4642_p6), [#allocation5], 256  }
0x154d   : > { %4892 = vsyncadd (%p4642_p6), [#allocation5], 4294967040 }
0x154e PF: > { %s5728_s25 = sld [smem:[#allocation33_spill]] }
0x1554   : > { %s86_s7 = sadd.s32 1, %s5728_s25  }
0x1555   : > { %p83_p5 = scmp.ge.s32.totalorder %s86_s7, 4  }
0x1557   :  { %85 = sbr.rel (!%p83_p5) target bundleno = 72 (0x48), region = 279 }
0x155e   :  { %3971 = vsyncpa [#allocation5], 1 }
0x155f   :  { %3973 = vsyncpa [#allocation5 + $0x1], 1 }

</bundles_post_ra>
